<compile_context>
chip_gen: v7x
topology: tpu7x:2x2x1
jax: 0.10.0
libtpu: 0.0.40
codegen_flags: <defaults>
</compile_context>

<pallas_src>
import functools

import jax
import jax.numpy as jnp
from jax.experimental import pallas as pl
from jax.experimental.pallas import tpu as pltpu

_EPS = 1e-5
_HIGH = jax.lax.Precision.HIGHEST     # reference path only
_VMEM_LIMIT = 32 * 1024 * 1024


def _round_up(x, m):
    return (x + m - 1) // m * m


def _tiling(m, max_tile=1024, sub=16, min_split=32):
    """Pick (tile_rows, padded_rows).

    - rows padded only to the bf16 sublane multiple (16), never to a fixed tile;
    - >= 2 blocks whenever m >= 32 so v7x can shard the 'parallel' axis across
      its two TensorCores (padding overhead is at most one sublane group per
      block);
    - tiles capped at `max_tile` rows so big replay batches still pipeline with
      large, DMA-efficient blocks on v5e/v6e while staying far under VMEM.
    """
    m16 = _round_up(m, sub)
    nb = pl.cdiv(m16, max_tile)
    if m >= min_split and m16 >= 2 * sub:
        nb = max(nb, 2)
    nb = max(nb, 1)
    tile = _round_up(pl.cdiv(m16, nb), sub)
    nb = pl.cdiv(m16, tile)
    return tile, nb * tile


def _elu(x):
    # ELU(alpha=1). exp(x)-1 with the argument clamped to <= 0: cancellation
    # error near 0 is <= 1 f32 ulp (far below test tolerance) and avoids
    # relying on an expm1 lowering.
    return jnp.where(x > 0, x, jnp.exp(jnp.minimum(x, 0.0)) - 1.0)


# ----------------------------- Pallas kernels ------------------------------

def _conv_bn_elu_kernel(p_ref, w_ref, shift_ref, o_ref):
    # patches tile (TM, K) bf16 @ BN-folded weights (K, OC) bf16 -> f32 acc,
    # + folded (conv bias + BN) shift, ELU, bf16 store of only the real
    # channels. Weights/shift stay VMEM-resident across the grid.
    acc = jnp.dot(p_ref[...], w_ref[...], preferred_element_type=jnp.float32)
    o_ref[...] = _elu(acc + shift_ref[...]).astype(o_ref.dtype)


def _conv3_head_kernel(p_ref, w3_ref, s3_ref, w1_ref, b1_ref, w2_ref, b2_ref,
                       o_ref, *, actions, apad):
    # Fused conv3 (1x1 output map => plain matmul) + dueling head.
    # conv3: (TB, 256) @ (256, 64) + shift, ELU.
    h3 = _elu(jnp.dot(p_ref[...], w3_ref[...],
                      preferred_element_type=jnp.float32) + s3_ref[...])
    # Layer 1: fused value/advantage hidden (64 -> 512), ELU.
    h = _elu(jnp.dot(h3.astype(jnp.bfloat16), w1_ref[...],
                     preferred_element_type=jnp.float32) + b1_ref[...])
    # Layer 2: block-diagonal (512 -> 2*apad); [:, :apad]=value, [:, apad:]=adv.
    y = jnp.dot(h.astype(jnp.bfloat16), w2_ref[...],
                preferred_element_type=jnp.float32) + b2_ref[...]
    value = y[:, :apad]
    adv = y[:, apad:]
    # Padded advantage columns are exactly zero, so summing all apad columns
    # equals the sum over the real `actions` columns.
    adv_mean = jnp.sum(adv, axis=1, keepdims=True) * (1.0 / actions)
    o_ref[...] = value + adv - adv_mean


def _dueling_head_kernel(x_ref, w1_ref, b1_ref, w2_ref, b2_ref, o_ref, *,
                         actions, apad):
    # Generic fallback head (conv3 output map larger than 1x1).
    h = _elu(jnp.dot(x_ref[...], w1_ref[...],
                     preferred_element_type=jnp.float32) + b1_ref[...])
    y = jnp.dot(h.astype(jnp.bfloat16), w2_ref[...],
                preferred_element_type=jnp.float32) + b2_ref[...]
    value = y[:, :apad]
    adv = y[:, apad:]
    adv_mean = jnp.sum(adv, axis=1, keepdims=True) * (1.0 / actions)
    o_ref[...] = value + adv - adv_mean


# ------------------------------- JAX glue -----------------------------------

def _im2col(x_nhwc, kh, kw, stride):
    """(N,H,W,C) -> (N*OH*OW, KH*KW*C) patch matrix, rows ordered (kh,kw,c)."""
    n, h, w, c = x_nhwc.shape
    oh = (h - kh) // stride + 1
    ow = (w - kw) // stride + 1
    cols = []
    for i in range(kh):
        for j in range(kw):
            cols.append(x_nhwc[:, i:i + oh * stride:stride,
                               j:j + ow * stride:stride, :])
    patches = jnp.stack(cols, axis=3)               # (N, OH, OW, KH*KW, C)
    # TODO(synk): patches are still materialized by XLA in HBM (now in bf16);
    # forming them inside the kernel from an NHWC input tile (pl.ANY +
    # make_async_copy of strided row strips) would cut conv1 HBM traffic a
    # further ~4x but needs strided sub-lane slicing not cleanly expressible
    # in Mosaic today.
    return patches.reshape(n * oh * ow, kh * kw * c), oh, ow


def _conv_bn_elu(x_nhwc, w_mat, shift, k, stride):
    n = x_nhwc.shape[0]
    patches, oh, ow = _im2col(x_nhwc, k, k, stride)     # already bf16
    m, kdim = patches.shape
    oc = w_mat.shape[1]
    tile_m, m_pad = _tiling(m)
    if m_pad != m:
        patches = jnp.pad(patches, ((0, m_pad - m), (0, 0)))
    out = pl.pallas_call(
        _conv_bn_elu_kernel,
        out_shape=jax.ShapeDtypeStruct((m_pad, oc), jnp.bfloat16),
        grid=(m_pad // tile_m,),
        in_specs=[
            pl.BlockSpec((tile_m, kdim), lambda i: (i, 0)),
            pl.BlockSpec((kdim, oc), lambda i: (0, 0)),     # resident weights
            pl.BlockSpec((1, oc), lambda i: (0, 0)),        # resident shift
        ],
        out_specs=pl.BlockSpec((tile_m, oc), lambda i: (i, 0)),
        compiler_params=pltpu.CompilerParams(
            dimension_semantics=("parallel",),
            vmem_limit_bytes=_VMEM_LIMIT),
    )(patches, w_mat, shift)
    return out[:m].reshape(n, oh, ow, oc)


def _fused_conv3_head(patches3, prep, actions):
    n, kdim = patches3.shape
    apad = prep["h2_w"].shape[1] // 2
    tile_b, n_pad = _tiling(n, max_tile=512)
    if n_pad != n:
        patches3 = jnp.pad(patches3, ((0, n_pad - n), (0, 0)))
    out = pl.pallas_call(
        functools.partial(_conv3_head_kernel, actions=actions, apad=apad),
        out_shape=jax.ShapeDtypeStruct((n_pad, apad), jnp.float32),
        grid=(n_pad // tile_b,),
        in_specs=[
            pl.BlockSpec((tile_b, kdim), lambda i: (i, 0)),
            pl.BlockSpec(prep["c3_w"].shape, lambda i: (0, 0)),
            pl.BlockSpec(prep["c3_shift"].shape, lambda i: (0, 0)),
            pl.BlockSpec(prep["h1_w"].shape, lambda i: (0, 0)),
            pl.BlockSpec(prep["h1_b"].shape, lambda i: (0, 0)),
            pl.BlockSpec(prep["h2_w"].shape, lambda i: (0, 0)),
            pl.BlockSpec(prep["h2_b"].shape, lambda i: (0, 0)),
        ],
        out_specs=pl.BlockSpec((tile_b, apad), lambda i: (i, 0)),
        compiler_params=pltpu.CompilerParams(
            dimension_semantics=("parallel",),
            vmem_limit_bytes=_VMEM_LIMIT),
    )(patches3, prep["c3_w"], prep["c3_shift"], prep["h1_w"], prep["h1_b"],
      prep["h2_w"], prep["h2_b"])
    return out[:n, :actions]


def _dueling_head(flat, prep, actions):
    n, f = flat.shape
    apad = prep["h2_w"].shape[1] // 2
    tile_b, n_pad = _tiling(n, max_tile=512)
    if n_pad != n:
        flat = jnp.pad(flat, ((0, n_pad - n), (0, 0)))
    out = pl.pallas_call(
        functools.partial(_dueling_head_kernel, actions=actions, apad=apad),
        out_shape=jax.ShapeDtypeStruct((n_pad, apad), jnp.float32),
        grid=(n_pad // tile_b,),
        in_specs=[
            pl.BlockSpec((tile_b, f), lambda i: (i, 0)),
            pl.BlockSpec(prep["h1_w"].shape, lambda i: (0, 0)),
            pl.BlockSpec(prep["h1_b"].shape, lambda i: (0, 0)),
            pl.BlockSpec(prep["h2_w"].shape, lambda i: (0, 0)),
            pl.BlockSpec(prep["h2_b"].shape, lambda i: (0, 0)),
        ],
        out_specs=pl.BlockSpec((tile_b, apad), lambda i: (i, 0)),
        compiler_params=pltpu.CompilerParams(
            dimension_semantics=("parallel",),
            vmem_limit_bytes=_VMEM_LIMIT),
    )(flat, prep["h1_w"], prep["h1_b"], prep["h2_w"], prep["h2_b"])
    return out[:n, :actions]


def ddqn_forward(prep, x_nchw, actions):
    # Cast to bf16 BEFORE the layout transpose and im2col: halves the HBM
    # traffic of the dominant conv1 patch stream (numerically identical).
    x = jnp.transpose(x_nchw.astype(jnp.bfloat16), (0, 2, 3, 1))   # NCHW->NHWC
    x = _conv_bn_elu(x, prep["c1_w"], prep["c1_shift"], 8, 4)
    x = _conv_bn_elu(x, prep["c2_w"], prep["c2_shift"], 4, 2)
    n, h2, w2, _ = x.shape
    if h2 - 1 == 1 and w2 - 1 == 1:
        # conv3 output map is 1x1 (canonical 32x32 DQN input): conv3 is a plain
        # matmul; fuse it with the dueling head into a single pallas_call.
        patches3, _, _ = _im2col(x, 2, 2, 1)       # (N, 2*2*64)
        return _fused_conv3_head(patches3, prep, actions)
    # Generic fallback for larger spatial inputs.
    # TODO(synk): conv2 could also be pulled into the fused tail via
    # pltpu.emit_pipeline for an extra launch/HBM saving at small batch.
    x = _conv_bn_elu(x, prep["c3_w"], prep["c3_shift"], 2, 1)
    flat = x.reshape(n, -1)             # NHWC flatten; FC rows pre-permuted
    return _dueling_head(flat, prep, actions)


# ------------------------------ param prep ----------------------------------

def prepare_params(p, h, w):
    """One-time fold: BN + conv bias into the conv matmul, FC row permutation
    to NHWC flatten order, dueling-head weight fusion (value/advantage packed
    side-by-side / block-diagonally), bf16 casts of all MXU operands."""
    def fold_conv(w_hwio, conv_b, bn):
        gamma, beta, rmean, rvar = bn
        kh, kw, ic, oc = w_hwio.shape
        scale = gamma / jnp.sqrt(rvar + _EPS)
        shift = beta + scale * (conv_b - rmean)        # conv bias folded in
        w_mat = (w_hwio.reshape(kh * kw * ic, oc) * scale[None, :])
        return w_mat.astype(jnp.bfloat16), shift.reshape(1, oc).astype(jnp.float32)

    c1_w, c1_s = fold_conv(p["conv1_w"], p["conv1_b"], p["bn1"])
    c2_w, c2_s = fold_conv(p["conv2_w"], p["conv2_b"], p["bn2"])
    c3_w, c3_s = fold_conv(p["conv3_w"], p["conv3_b"], p["bn3"])

    def csz(s, kk, st):
        return (s - (kk - 1) - 1) // st + 1
    ch = csz(csz(csz(h, 8, 4), 4, 2), 2, 1)
    cw = csz(csz(csz(w, 8, 4), 4, 2), 2, 1)

    def permute_rows(wmat):  # rows (c,h,w) order -> (h,w,c); matches NHWC flatten
        o = wmat.shape[1]
        return wmat.reshape(64, ch, cw, o).transpose(1, 2, 0, 3).reshape(-1, o)

    h1_w = jnp.concatenate(
        [permute_rows(p["fc1_w"]), permute_rows(p["adv1_w"])], axis=1)
    h1_b = jnp.concatenate([p["fc1_b"], p["adv1_b"]]).reshape(1, -1)

    a = p["fc2_w"].shape[1]
    hid = p["fc2_w"].shape[0]
    apad = _round_up(max(a, 1), 128)
    w2 = jnp.zeros((2 * hid, 2 * apad), jnp.float32)
    w2 = w2.at[:hid, :a].set(p["fc2_w"]).at[hid:, apad:apad + a].set(p["adv2_w"])
    b2 = jnp.zeros((1, 2 * apad), jnp.float32)
    b2 = b2.at[0, :a].set(p["fc2_b"]).at[0, apad:apad + a].set(p["adv2_b"])

    return dict(
        c1_w=c1_w, c1_shift=c1_s,
        c2_w=c2_w, c2_shift=c2_s,
        c3_w=c3_w, c3_shift=c3_s,
        h1_w=h1_w.astype(jnp.bfloat16), h1_b=h1_b.astype(jnp.float32),
        h2_w=w2.astype(jnp.bfloat16), h2_b=b2,
    )


# --------------------------- pure-JAX reference ------------------------------

def reference_forward(params, x_nchw):
    x = jnp.transpose(x_nchw, (0, 2, 3, 1))

    def conv_bn_elu(x, w, b, bn, stride):
        gamma, beta, rmean, rvar = bn
        y = jax.lax.conv_general_dilated(
            x, w, window_strides=(stride, stride), padding="VALID",
            dimension_numbers=("NHWC", "HWIO", "NHWC"), precision=_HIGH) + b
        y = gamma * (y - rmean) / jnp.sqrt(rvar + _EPS) + beta
        return jax.nn.elu(y)

    x = conv_bn_elu(x, params["conv1_w"], params["conv1_b"], params["bn1"], 4)
    x = conv_bn_elu(x, params["conv2_w"], params["conv2_b"], params["bn2"], 2)
    x = conv_bn_elu(x, params["conv3_w"], params["conv3_b"], params["bn3"], 1)
    n = x.shape[0]
    flat = jnp.transpose(x, (0, 3, 1, 2)).reshape(n, -1)   # PyTorch (C,H,W) order
    dot = functools.partial(jnp.dot, precision=_HIGH)
    v = jax.nn.elu(dot(flat, params["fc1_w"]) + params["fc1_b"])
    v = dot(v, params["fc2_w"]) + params["fc2_b"]
    a = jax.nn.elu(dot(flat, params["adv1_w"]) + params["adv1_b"])
    a = dot(a, params["adv2_w"]) + params["adv2_b"]
    return v + a - jnp.mean(a, axis=1, keepdims=True)


# ------------------------------ param init -----------------------------------

def init_params(key, h, w, actions_qty):
    def csz(s, k, st):
        return (s - (k - 1) - 1) // st + 1

    conv_h = csz(csz(csz(h, 8, 4), 4, 2), 2, 1)
    conv_w = csz(csz(csz(w, 8, 4), 4, 2), 2, 1)
    flat = 64 * conv_h * conv_w

    keys = jax.random.split(key, 17)

    def nrm(k, shape, scale=0.05):
        return scale * jax.random.normal(k, shape, jnp.float32)

    def bn(k, c):
        k1, k2, k3, k4 = jax.random.split(k, 4)
        return (1.0 + 0.1 * jax.random.normal(k1, (c,), jnp.float32),   # gamma
                0.05 * jax.random.normal(k2, (c,), jnp.float32),        # beta
                0.01 * jax.random.normal(k3, (c,), jnp.float32),        # run mean
                1.0 + 0.1 * jax.random.uniform(k4, (c,), jnp.float32))  # run var

    return dict(
        conv1_w=nrm(keys[0], (8, 8, 4, 32)), conv1_b=nrm(keys[1], (32,)),
        bn1=bn(keys[2], 32),
        conv2_w=nrm(keys[3], (4, 4, 32, 64)), conv2_b=nrm(keys[4], (64,)),
        bn2=bn(keys[5], 64),
        conv3_w=nrm(keys[6], (2, 2, 64, 64)), conv3_b=nrm(keys[7], (64,)),
        bn3=bn(keys[8], 64),
        fc1_w=nrm(keys[9], (flat, 256)), fc1_b=nrm(keys[10], (256,)),
        fc2_w=nrm(keys[11], (256, actions_qty)), fc2_b=nrm(keys[12], (actions_qty,)),
        adv1_w=nrm(keys[13], (flat, 256)), adv1_b=nrm(keys[14], (256,)),
        adv2_w=nrm(keys[15], (256, actions_qty)), adv2_b=nrm(keys[16], (actions_qty,)),
    )


# --------------------------------- main --------------------------------------

if __name__ == "__main__":
    # Smallest spatial size that survives the three conv stages is >= 26;
    # use H = W = 32 (conv output 1x1, flat features = 64).
    batch, h, w, actions_qty = 2, 32, 32, 6
    # TODO(synk): BatchNorm is implemented in eval mode (running stats); PyTorch
    # training-mode batch statistics are not reproduced.

    key = jax.random.PRNGKey(0)
    pkey, xkey = jax.random.split(key)
    params = init_params(pkey, h, w, actions_qty)
    x = jax.random.normal(xkey, (batch, 4, h, w), jnp.float32)

    prep = prepare_params(params, h, w)                # one-time weight prep
    fwd = jax.jit(functools.partial(ddqn_forward, actions=actions_qty))
    out = fwd(prep, x)
    jax.block_until_ready(out)

    ref = reference_forward(params, x)
    assert out.shape == (batch, actions_qty)
    # bf16 MXU path vs f32 HIGHEST reference: allow 2e-2.
    assert jnp.allclose(out, ref, atol=2e-2, rtol=2e-2), (
        f"max abs diff {jnp.max(jnp.abs(out - ref))}")

    print("KERNEL_OK")
</pallas_src>

<mosaic_0001>
module attributes {stable_mosaic.version = 11 : i64} {
  func.func @_conv_bn_elu_kernel(%arg0: i32, %arg1: memref<64x256xbf16, #tpu.memory_space<vmem>>, %arg2: memref<256x32xbf16, #tpu.memory_space<vmem>>, %arg3: memref<1x32xf32, #tpu.memory_space<vmem>>, %arg4: memref<64x32xbf16, #tpu.memory_space<vmem>>) attributes {dimension_semantics = [#tpu.dimension_semantics<parallel>], iteration_bounds = array<i64: 2>, scalar_prefetch = 0 : i64, scratch_operands = 0 : i64, tpu.core_type = #tpu.core_type<tc>, window_params = [{transform_indices = @transform_0, window_bounds = array<i64: 64, 256>}, {pipeline_mode = #tpu.pipeline_mode<synchronous>, transform_indices = @transform_1, window_bounds = array<i64: 256, 32>}, {pipeline_mode = #tpu.pipeline_mode<synchronous>, transform_indices = @transform_2, window_bounds = array<i64: 1, 32>}, {transform_indices = @transform_3, window_bounds = array<i64: 64, 32>}]} {
    %c0 = arith.constant 0 : index
    %c0_0 = arith.constant 0 : index
    %0 = vector.load %arg1[%c0, %c0_0] : memref<64x256xbf16, #tpu.memory_space<vmem>>, vector<64x256xbf16>
    %c0_1 = arith.constant 0 : index
    %c0_2 = arith.constant 0 : index
    %1 = vector.load %arg2[%c0_1, %c0_2] : memref<256x32xbf16, #tpu.memory_space<vmem>>, vector<256x32xbf16>
    %cst = arith.constant dense<0.000000e+00> : vector<64x32xf32>
    %2 = tpu.matmul %0, %1, %cst {dimension_numbers = #tpu.dot_dimension_numbers<[1], [0], [0], [1], [0, 0, 1, 1], [], []>} : vector<64x256xbf16>, vector<256x32xbf16>, vector<64x32xf32> -> vector<64x32xf32>
    %c0_3 = arith.constant 0 : index
    %c0_4 = arith.constant 0 : index
    %3 = vector.load %arg3[%c0_3, %c0_4] : memref<1x32xf32, #tpu.memory_space<vmem>>, vector<1x32xf32>
    %4 = vector.broadcast %3 : vector<1x32xf32> to vector<64x32xf32>
    %5 = arith.addf %2, %4 : vector<64x32xf32>
    %cst_5 = arith.constant 0.000000e+00 : f32
    %6 = vector.broadcast %cst_5 : f32 to vector<64x32xf32>
    %7 = arith.cmpf ogt, %5, %6 : vector<64x32xf32>
    %cst_6 = arith.constant 0.000000e+00 : f32
    %8 = vector.broadcast %cst_6 : f32 to vector<64x32xf32>
    %9 = arith.minimumf %5, %8 : vector<64x32xf32>
    %10 = math.exp %9 : vector<64x32xf32>
    %cst_7 = arith.constant 1.000000e+00 : f32
    %11 = vector.broadcast %cst_7 : f32 to vector<64x32xf32>
    %12 = arith.subf %10, %11 : vector<64x32xf32>
    %13 = arith.select %7, %5, %12 : vector<64x32xi1>, vector<64x32xf32>
    %14 = arith.truncf %13 : vector<64x32xf32> to vector<64x32xbf16>
    %c0_8 = arith.constant 0 : index
    %c0_9 = arith.constant 0 : index
    %15 = vector.load %arg4[%c0_8, %c0_9] : memref<64x32xbf16, #tpu.memory_space<vmem>>, vector<64x32xbf16>
    tpu.vector_store %arg4[%c0_8, %c0_9], %14 {strides = array<i32>} : memref<64x32xbf16, #tpu.memory_space<vmem>>, vector<64x32xbf16>,
    return
  }
  func.func @transform_0(%arg0: i32) -> (i32, i32) {
    %c0_i32 = arith.constant 0 : i32
    %c0_i32_0 = arith.constant 0 : i32
    return %arg0, %c0_i32 : i32, i32
  }
  func.func @transform_1(%arg0: i32) -> (i32, i32) {
    %c0_i32 = arith.constant 0 : i32
    %c0_i32_0 = arith.constant 0 : i32
    %c0_i32_1 = arith.constant 0 : i32
    return %c0_i32, %c0_i32_0 : i32, i32
  }
  func.func @transform_2(%arg0: i32) -> (i32, i32) {
    %c0_i32 = arith.constant 0 : i32
    %c0_i32_0 = arith.constant 0 : i32
    %c0_i32_1 = arith.constant 0 : i32
    return %c0_i32, %c0_i32_0 : i32, i32
  }
  func.func @transform_3(%arg0: i32) -> (i32, i32) {
    %c0_i32 = arith.constant 0 : i32
    %c0_i32_0 = arith.constant 0 : i32
    return %arg0, %c0_i32 : i32, i32
  }
}

module attributes {stable_mosaic.version = 11 : i64} {
  func.func @_conv_bn_elu_kernel(%arg0: i32, %arg1: memref<16x512xbf16, #tpu.memory_space<vmem>>, %arg2: memref<512x64xbf16, #tpu.memory_space<vmem>>, %arg3: memref<1x64xf32, #tpu.memory_space<vmem>>, %arg4: memref<16x64xbf16, #tpu.memory_space<vmem>>) attributes {dimension_semantics = [#tpu.dimension_semantics<parallel>], iteration_bounds = array<i64: 1>, scalar_prefetch = 0 : i64, scratch_operands = 0 : i64, tpu.core_type = #tpu.core_type<tc>, window_params = [{transform_indices = @transform_0, window_bounds = array<i64: 16, 512>}, {pipeline_mode = #tpu.pipeline_mode<synchronous>, transform_indices = @transform_1, window_bounds = array<i64: 512, 64>}, {pipeline_mode = #tpu.pipeline_mode<synchronous>, transform_indices = @transform_2, window_bounds = array<i64: 1, 64>}, {transform_indices = @transform_3, window_bounds = array<i64: 16, 64>}]} {
    %c0 = arith.constant 0 : index
    %c0_0 = arith.constant 0 : index
    %0 = vector.load %arg1[%c0, %c0_0] : memref<16x512xbf16, #tpu.memory_space<vmem>>, vector<16x512xbf16>
    %c0_1 = arith.constant 0 : index
    %c0_2 = arith.constant 0 : index
    %1 = vector.load %arg2[%c0_1, %c0_2] : memref<512x64xbf16, #tpu.memory_space<vmem>>, vector<512x64xbf16>
    %cst = arith.constant dense<0.000000e+00> : vector<16x64xf32>
    %2 = tpu.matmul %0, %1, %cst {dimension_numbers = #tpu.dot_dimension_numbers<[1], [0], [0], [1], [0, 0, 1, 1], [], []>} : vector<16x512xbf16>, vector<512x64xbf16>, vector<16x64xf32> -> vector<16x64xf32>
    %c0_3 = arith.constant 0 : index
    %c0_4 = arith.constant 0 : index
    %3 = vector.load %arg3[%c0_3, %c0_4] : memref<1x64xf32, #tpu.memory_space<vmem>>, vector<1x64xf32>
    %4 = vector.broadcast %3 : vector<1x64xf32> to vector<16x64xf32>
    %5 = arith.addf %2, %4 : vector<16x64xf32>
    %cst_5 = arith.constant 0.000000e+00 : f32
    %6 = vector.broadcast %cst_5 : f32 to vector<16x64xf32>
    %7 = arith.cmpf ogt, %5, %6 : vector<16x64xf32>
    %cst_6 = arith.constant 0.000000e+00 : f32
    %8 = vector.broadcast %cst_6 : f32 to vector<16x64xf32>
    %9 = arith.minimumf %5, %8 : vector<16x64xf32>
    %10 = math.exp %9 : vector<16x64xf32>
    %cst_7 = arith.constant 1.000000e+00 : f32
    %11 = vector.broadcast %cst_7 : f32 to vector<16x64xf32>
    %12 = arith.subf %10, %11 : vector<16x64xf32>
    %13 = arith.select %7, %5, %12 : vector<16x64xi1>, vector<16x64xf32>
    %14 = arith.truncf %13 : vector<16x64xf32> to vector<16x64xbf16>
    %c0_8 = arith.constant 0 : index
    %c0_9 = arith.constant 0 : index
    %15 = vector.load %arg4[%c0_8, %c0_9] : memref<16x64xbf16, #tpu.memory_space<vmem>>, vector<16x64xbf16>
    tpu.vector_store %arg4[%c0_8, %c0_9], %14 {strides = array<i32>} : memref<16x64xbf16, #tpu.memory_space<vmem>>, vector<16x64xbf16>,
    return
  }
  func.func @transform_0(%arg0: i32) -> (i32, i32) {
    %c0_i32 = arith.constant 0 : i32
    %c0_i32_0 = arith.constant 0 : i32
    return %arg0, %c0_i32 : i32, i32
  }
  func.func @transform_1(%arg0: i32) -> (i32, i32) {
    %c0_i32 = arith.constant 0 : i32
    %c0_i32_0 = arith.constant 0 : i32
    %c0_i32_1 = arith.constant 0 : i32
    return %c0_i32, %c0_i32_0 : i32, i32
  }
  func.func @transform_2(%arg0: i32) -> (i32, i32) {
    %c0_i32 = arith.constant 0 : i32
    %c0_i32_0 = arith.constant 0 : i32
    %c0_i32_1 = arith.constant 0 : i32
    return %c0_i32, %c0_i32_0 : i32, i32
  }
  func.func @transform_3(%arg0: i32) -> (i32, i32) {
    %c0_i32 = arith.constant 0 : i32
    %c0_i32_0 = arith.constant 0 : i32
    return %arg0, %c0_i32 : i32, i32
  }
}

module attributes {stable_mosaic.version = 11 : i64} {
  func.func @_conv3_head_kernel(%arg0: i32, %arg1: memref<16x256xbf16, #tpu.memory_space<vmem>>, %arg2: memref<256x64xbf16, #tpu.memory_space<vmem>>, %arg3: memref<1x64xf32, #tpu.memory_space<vmem>>, %arg4: memref<64x512xbf16, #tpu.memory_space<vmem>>, %arg5: memref<1x512xf32, #tpu.memory_space<vmem>>, %arg6: memref<512x256xbf16, #tpu.memory_space<vmem>>, %arg7: memref<1x256xf32, #tpu.memory_space<vmem>>, %arg8: memref<16x128xf32, #tpu.memory_space<vmem>>) attributes {dimension_semantics = [#tpu.dimension_semantics<parallel>], iteration_bounds = array<i64: 1>, scalar_prefetch = 0 : i64, scratch_operands = 0 : i64, tpu.core_type = #tpu.core_type<tc>, window_params = [{transform_indices = @transform_0, window_bounds = array<i64: 16, 256>}, {pipeline_mode = #tpu.pipeline_mode<synchronous>, transform_indices = @transform_1, window_bounds = array<i64: 256, 64>}, {pipeline_mode = #tpu.pipeline_mode<synchronous>, transform_indices = @transform_2, window_bounds = array<i64: 1, 64>}, {pipeline_mode = #tpu.pipeline_mode<synchronous>, transform_indices = @transform_3, window_bounds = array<i64: 64, 512>}, {pipeline_mode = #tpu.pipeline_mode<synchronous>, transform_indices = @transform_4, window_bounds = array<i64: 1, 512>}, {pipeline_mode = #tpu.pipeline_mode<synchronous>, transform_indices = @transform_5, window_bounds = array<i64: 512, 256>}, {pipeline_mode = #tpu.pipeline_mode<synchronous>, transform_indices = @transform_6, window_bounds = array<i64: 1, 256>}, {transform_indices = @transform_7, window_bounds = array<i64: 16, 128>}]} {
    %c0 = arith.constant 0 : index
    %c0_0 = arith.constant 0 : index
    %0 = vector.load %arg1[%c0, %c0_0] : memref<16x256xbf16, #tpu.memory_space<vmem>>, vector<16x256xbf16>
    %c0_1 = arith.constant 0 : index
    %c0_2 = arith.constant 0 : index
    %1 = vector.load %arg2[%c0_1, %c0_2] : memref<256x64xbf16, #tpu.memory_space<vmem>>, vector<256x64xbf16>
    %cst = arith.constant dense<0.000000e+00> : vector<16x64xf32>
    %2 = tpu.matmul %0, %1, %cst {dimension_numbers = #tpu.dot_dimension_numbers<[1], [0], [0], [1], [0, 0, 1, 1], [], []>} : vector<16x256xbf16>, vector<256x64xbf16>, vector<16x64xf32> -> vector<16x64xf32>
    %c0_3 = arith.constant 0 : index
    %c0_4 = arith.constant 0 : index
    %3 = vector.load %arg3[%c0_3, %c0_4] : memref<1x64xf32, #tpu.memory_space<vmem>>, vector<1x64xf32>
    %4 = vector.broadcast %3 : vector<1x64xf32> to vector<16x64xf32>
    %5 = arith.addf %2, %4 : vector<16x64xf32>
    %cst_5 = arith.constant 0.000000e+00 : f32
    %6 = vector.broadcast %cst_5 : f32 to vector<16x64xf32>
    %7 = arith.cmpf ogt, %5, %6 : vector<16x64xf32>
    %cst_6 = arith.constant 0.000000e+00 : f32
    %8 = vector.broadcast %cst_6 : f32 to vector<16x64xf32>
    %9 = arith.minimumf %5, %8 : vector<16x64xf32>
    %10 = math.exp %9 : vector<16x64xf32>
    %cst_7 = arith.constant 1.000000e+00 : f32
    %11 = vector.broadcast %cst_7 : f32 to vector<16x64xf32>
    %12 = arith.subf %10, %11 : vector<16x64xf32>
    %13 = arith.select %7, %5, %12 : vector<16x64xi1>, vector<16x64xf32>
    %14 = arith.truncf %13 : vector<16x64xf32> to vector<16x64xbf16>
    %c0_8 = arith.constant 0 : index
    %c0_9 = arith.constant 0 : index
    %15 = vector.load %arg4[%c0_8, %c0_9] : memref<64x512xbf16, #tpu.memory_space<vmem>>, vector<64x512xbf16>
    %cst_10 = arith.constant dense<0.000000e+00> : vector<16x512xf32>
    %16 = tpu.matmul %14, %15, %cst_10 {dimension_numbers = #tpu.dot_dimension_numbers<[1], [0], [0], [1], [0, 0, 1, 1], [], []>} : vector<16x64xbf16>, vector<64x512xbf16>, vector<16x512xf32> -> vector<16x512xf32>
    %c0_11 = arith.constant 0 : index
    %c0_12 = arith.constant 0 : index
    %17 = vector.load %arg5[%c0_11, %c0_12] : memref<1x512xf32, #tpu.memory_space<vmem>>, vector<1x512xf32>
    %18 = vector.broadcast %17 : vector<1x512xf32> to vector<16x512xf32>
    %19 = arith.addf %16, %18 : vector<16x512xf32>
    %cst_13 = arith.constant 0.000000e+00 : f32
    %20 = vector.broadcast %cst_13 : f32 to vector<16x512xf32>
    %21 = arith.cmpf ogt, %19, %20 : vector<16x512xf32>
    %cst_14 = arith.constant 0.000000e+00 : f32
    %22 = vector.broadcast %cst_14 : f32 to vector<16x512xf32>
    %23 = arith.minimumf %19, %22 : vector<16x512xf32>
    %24 = math.exp %23 : vector<16x512xf32>
    %cst_15 = arith.constant 1.000000e+00 : f32
    %25 = vector.broadcast %cst_15 : f32 to vector<16x512xf32>
    %26 = arith.subf %24, %25 : vector<16x512xf32>
    %27 = arith.select %21, %19, %26 : vector<16x512xi1>, vector<16x512xf32>
    %28 = arith.truncf %27 : vector<16x512xf32> to vector<16x512xbf16>
    %c0_16 = arith.constant 0 : index
    %c0_17 = arith.constant 0 : index
    %29 = vector.load %arg6[%c0_16, %c0_17] : memref<512x256xbf16, #tpu.memory_space<vmem>>, vector<512x256xbf16>
    %cst_18 = arith.constant dense<0.000000e+00> : vector<16x256xf32>
    %30 = tpu.matmul %28, %29, %cst_18 {dimension_numbers = #tpu.dot_dimension_numbers<[1], [0], [0], [1], [0, 0, 1, 1], [], []>} : vector<16x512xbf16>, vector<512x256xbf16>, vector<16x256xf32> -> vector<16x256xf32>
    %c0_19 = arith.constant 0 : index
    %c0_20 = arith.constant 0 : index
    %31 = vector.load %arg7[%c0_19, %c0_20] : memref<1x256xf32, #tpu.memory_space<vmem>>, vector<1x256xf32>
    %32 = vector.broadcast %31 : vector<1x256xf32> to vector<16x256xf32>
    %33 = arith.addf %30, %32 : vector<16x256xf32>
    %34 = vector.extract_strided_slice %33 {offsets = [0, 0], sizes = [16, 128], strides = [1, 1]} : vector<16x256xf32> to vector<16x128xf32>
    %35 = vector.extract_strided_slice %33 {offsets = [0, 128], sizes = [16, 128], strides = [1, 1]} : vector<16x256xf32> to vector<16x128xf32>
    %cst_21 = arith.constant dense<0.000000e+00> : vector<16xf32>
    %36 = vector.multi_reduction <add>, %35, %cst_21 [1] : vector<16x128xf32> to vector<16xf32>
    %37 = vector.shape_cast %36 : vector<16xf32> to vector<16x1xf32>
    %cst_22 = arith.constant 0.166666672 : f32
    %38 = vector.broadcast %cst_22 : f32 to vector<16x1xf32>
    %39 = arith.mulf %37, %38 : vector<16x1xf32>
    %40 = arith.addf %34, %35 : vector<16x128xf32>
    %41 = vector.broadcast %39 : vector<16x1xf32> to vector<16x128xf32>
    %42 = arith.subf %40, %41 : vector<16x128xf32>
    %c0_23 = arith.constant 0 : index
    %c0_24 = arith.constant 0 : index
    %43 = vector.load %arg8[%c0_23, %c0_24] : memref<16x128xf32, #tpu.memory_space<vmem>>, vector<16x128xf32>
    tpu.vector_store %arg8[%c0_23, %c0_24], %42 {strides = array<i32>} : memref<16x128xf32, #tpu.memory_space<vmem>>, vector<16x128xf32>,
    return
  }
  func.func @transform_0(%arg0: i32) -> (i32, i32) {
    %c0_i32 = arith.constant 0 : i32
    %c0_i32_0 = arith.constant 0 : i32
    return %arg0, %c0_i32 : i32, i32
  }
  func.func @transform_1(%arg0: i32) -> (i32, i32) {
    %c0_i32 = arith.constant 0 : i32
    %c0_i32_0 = arith.constant 0 : i32
    %c0_i32_1 = arith.constant 0 : i32
    return %c0_i32, %c0_i32_0 : i32, i32
  }
  func.func @transform_2(%arg0: i32) -> (i32, i32) {
    %c0_i32 = arith.constant 0 : i32
    %c0_i32_0 = arith.constant 0 : i32
    %c0_i32_1 = arith.constant 0 : i32
    return %c0_i32, %c0_i32_0 : i32, i32
  }
  func.func @transform_3(%arg0: i32) -> (i32, i32) {
    %c0_i32 = arith.constant 0 : i32
    %c0_i32_0 = arith.constant 0 : i32
    %c0_i32_1 = arith.constant 0 : i32
    return %c0_i32, %c0_i32_0 : i32, i32
  }
  func.func @transform_4(%arg0: i32) -> (i32, i32) {
    %c0_i32 = arith.constant 0 : i32
    %c0_i32_0 = arith.constant 0 : i32
    %c0_i32_1 = arith.constant 0 : i32
    return %c0_i32, %c0_i32_0 : i32, i32
  }
  func.func @transform_5(%arg0: i32) -> (i32, i32) {
    %c0_i32 = arith.constant 0 : i32
    %c0_i32_0 = arith.constant 0 : i32
    %c0_i32_1 = arith.constant 0 : i32
    return %c0_i32, %c0_i32_0 : i32, i32
  }
  func.func @transform_6(%arg0: i32) -> (i32, i32) {
    %c0_i32 = arith.constant 0 : i32
    %c0_i32_0 = arith.constant 0 : i32
    %c0_i32_1 = arith.constant 0 : i32
    return %c0_i32, %c0_i32_0 : i32, i32
  }
  func.func @transform_7(%arg0: i32) -> (i32, i32) {
    %c0_i32 = arith.constant 0 : i32
    %c0_i32_0 = arith.constant 0 : i32
    return %arg0, %c0_i32 : i32, i32
  }
}

</mosaic_0001>

<bundles_post_ra>
// kernel: ddqn_forward.3
= control target key start
LH: loop header
LB: loop body
LE: loop exit
PB: predicated region body
PF: predicated region fallthrough
CT: control target
= control target key end

     0   :  { %s769_s12 = smov 0   ;;  %s874_s0 = inlined_call_operand.vmem [shape: bf16[128,256], index: 0, kind: input, shape index: {}]   ;;  %s875_s1 = inlined_call_operand.vmem [shape: bf16[256,32], index: 1, kind: input, shape index: {}]   ;;  %s876_s2 = inlined_call_operand.vmem [shape: f32[1,32], index: 2, kind: input, shape index: {}]   ;;  %s877_s3 = inlined_call_operand.vmem [shape: bf16[128,32], index: 3, kind: output, shape index: {}]  }
   0x1 LB: > { %s571_s13 = sadd.s32 4294967295, %s747_s12   ;;  %p575_p0 = scmp.ge.s32.totalorder %s747_s12, 1  ;;  %s747_s12 = sphi %s769_s12, %s13_s12  }
   0x2   : > { %p139_p1 = scmp.lt.s32.totalorder %s747_s12, 3 }
   0x4   : > { %p140_p2 = pnand %p575_p0, %p139_p1 }
   0x5   : > { %v697_v0 = vld [vmem:[%s875_s1 + $0x40] sm:$0xff] (!%p140_p2)   ;;  %s576_s16 = sshll.u32 (!%p140_p2), %s571_s13, 3  ;;  %v699_v2 = vld [vmem:[%s875_s1 + $0x48] sm:$0xff] (!%p140_p2)   ;;  %v701_v4 = vld [vmem:[%s875_s1 + $0x50] sm:$0xff] (!%p140_p2)   ;;  %vm506_vm1 = vcmask (!%p140_p2), 257024  }
   0x6   : > { %143 = sbr.rel (%p140_p2) target bundleno = 287 (0x11f), region = 32  ;;  %v698_v1 = vld [vmem:[%s875_s1] sm:$0xff] (!%p140_p2)   ;;  %633 = vmatprep.subr.bf16.mxu0 (!%p140_p2), %v697_v0  ;;  %673 = vmatprep.subr.bf16.mxu1 (!%p140_p2), %v697_v0  ;;  %v700_v3 = vld [vmem:[%s875_s1 + $0x8] sm:$0xff] (!%p140_p2)   ;;  %p165_p3 = scmp.lt.s32.totalorder (!%p140_p2), %s576_s16, 15  ;;  %v702_v5 = vld [vmem:[%s875_s1 + $0x10] sm:$0xff] (!%p140_p2)  }
   0x7   : > { %634 = vmatpush3.bf16.msra.mxu0 (!%p140_p2), %v698_v1  ;;  %681 = vmatpush3.bf16.msra.mxu1 (!%p140_p2), %v698_v1  ;;  %v703_v6 = vld [vmem:[%s875_s1 + $0x58] sm:$0xff] (!%p140_p2)   ;;  %v705_v8 = vld [vmem:[%s875_s1 + $0x60] sm:$0xff] (!%p140_p2)   ;;  %v707_v10 = vld [vmem:[%s875_s1 + $0x68] sm:$0xff] (!%p140_p2)  }
   0x8   : > { %635 = vmatprep.subr.bf16.mxu0 (!%p140_p2), %v699_v2  ;;  %674 = vmatprep.subr.bf16.mxu1 (!%p140_p2), %v699_v2  ;;  %v704_v7 = vld [vmem:[%s875_s1 + $0x18] sm:$0xff] (!%p140_p2)   ;;  %v706_v9 = vld [vmem:[%s875_s1 + $0x20] sm:$0xff] (!%p140_p2)   ;;  %v708_v13 = vld [vmem:[%s875_s1 + $0x28] sm:$0xff] (!%p140_p2)  }
   0x9   : > { %v709_v14 = vld [vmem:[%s875_s1 + $0x70] sm:$0xff] (!%p140_p2)   ;;  %v711_v16 = vld [vmem:[%s875_s1 + $0x78] sm:$0xff] (!%p140_p2)   ;;  %v581_v26 = vld [vmem:[%s876_s2] ss:$0 sm:$0xff] (!%p140_p2) }
   0xa   : > { %v710_v15 = vld [vmem:[%s875_s1 + $0x30] sm:$0xff] (!%p140_p2)   ;;  %v712_v17 = vld [vmem:[%s875_s1 + $0x38] sm:$0xff] (!%p140_p2)  }
   0xb   : > { %636 = vmatpush3.bf16.msra.mxu0 (!%p140_p2), %v700_v3  ;;  %682 = vmatpush3.bf16.msra.mxu1 (!%p140_p2), %v700_v3 }
   0xc   : > { %637 = vmatprep.subr.bf16.mxu0 (!%p140_p2), %v701_v4  ;;  %675 = vmatprep.subr.bf16.mxu1 (!%p140_p2), %v701_v4 }
   0xd   : > { %s879_s16 = smov (!%p165_p3, %s576_s16), 15 }
   0xe   : > { %s624_s4 = sshll.u32 %s879_s16, 3  ;;  %s580_s28 = sshll.u32 %s879_s16, 2 }
   0xf   : > { %638 = vmatpush3.bf16.msra.mxu0 %v702_v5  ;;  %683 = vmatpush3.bf16.msra.mxu1 %v702_v5  ;;  %s810_s9 = scalar_lea.vmem %s874_s0, %s624_s4  ;;  %s851_s4 = scalar_lea.vmem %s877_s3, %s580_s28 }
  0x10   : > { %639 = vmatprep.subr.bf16.mxu0 %v703_v6  ;;  %676 = vmatprep.subr.bf16.mxu1 %v703_v6  ;;  %v715_v11 = vld [vmem:[%s810_s9 + $0x4] ss:$8 sps:$4 sm:$0xff]   ;;  %v713_v18 = vld [vmem:[%s810_s9] ss:$8 sps:$4 sm:$0xff]   ;;  %v719_v20 = vld [vmem:[%s810_s9 + $0x14] ss:$8 sps:$4 sm:$0xff]  }
  0x11   : > { %v718_v12 = vld [vmem:[%s810_s9 + $0x24] ss:$8 sps:$4 sm:$0xff]   ;;  %393 = vmatprep.mubr.bf16.mxu0 %v715_v11  ;;  %v716_v19 = vld [vmem:[%s810_s9 + $0x20] ss:$8 sps:$4 sm:$0xff]   ;;  %v721_v21 = vld [vmem:[%s810_s9 + $0x34] ss:$8 sps:$4 sm:$0xff]  }
  0x12   : > { %409 = vmatprep.mubr.bf16.mxu1 %v718_v12  ;;  %v723_v22 = vld [vmem:[%s810_s9 + $0x10] ss:$8 sps:$4 sm:$0xff]  }
  0x13   : > { %640 = vmatpush3.bf16.msra.mxu0 %v704_v7  ;;  %684 = vmatpush3.bf16.msra.mxu1 %v704_v7  ;;  %v724_v23 = vld [vmem:[%s810_s9 + $0x30] ss:$8 sps:$4 sm:$0xff]  }
  0x14   : > { %641 = vmatprep.subr.bf16.mxu0 %v705_v8  ;;  %677 = vmatprep.subr.bf16.mxu1 %v705_v8 }
  0x17   : > { %642 = vmatpush3.bf16.msra.mxu0 %v706_v9  ;;  %685 = vmatpush3.bf16.msra.mxu1 %v706_v9 }
  0x18   : > { %643 = vmatprep.subr.bf16.mxu0 %v707_v10  ;;  %678 = vmatprep.subr.bf16.mxu1 %v707_v10 }
  0x1b   : > { %644 = vmatpush3.bf16.msra.mxu0 %v708_v13  ;;  %686 = vmatpush3.bf16.msra.mxu1 %v708_v13 }
  0x1c   : > { %645 = vmatprep.subr.bf16.mxu0 %v709_v14  ;;  %679 = vmatprep.subr.bf16.mxu1 %v709_v14 }
  0x1f   : > { %646 = vmatpush3.bf16.msra.mxu0 %v710_v15  ;;  %687 = vmatpush3.bf16.msra.mxu1 %v710_v15 }
  0x20   : > { %647 = vmatprep.subr.bf16.mxu0 %v711_v16  ;;  %680 = vmatprep.subr.bf16.mxu1 %v711_v16 }
  0x23   : > { %648 = vmatpush3.bf16.msra.mxu0 %v712_v17  ;;  %688 = vmatpush3.bf16.msra.mxu1 %v712_v17 }
  0x26   : > { %394 = vmatmul.mubr.bf16.vlgmr.msra.gmra.mrb[0].mxu0 %v713_v18  ;;  %410 = vmatmul.mubr.bf16.vlgmr.msra.gmra.mrb[0].mxu1 %v716_v19 }
  0x27   : > { %401 = vmatprep.mubr.bf16.mxu0 %v719_v20  ;;  %417 = vmatprep.mubr.bf16.mxu1 %v721_v21 }
  0x2e   : > { %402 = vmatmul.mubr.bf16.gmra.mrb[4].mxu0 %v723_v22  ;;  %418 = vmatmul.mubr.bf16.gmra.mrb[4].mxu1 %v724_v23 }
  0xf9   : > { %v649_v24 = vpop.f32.mrb[0].mxu0  ;;  %v661_v25 = vpop.f32.mrb[0].mxu1 }
  0xfa   : > { %v650_v27 = vpop.f32.mrb[1].mxu0  ;;  %v662_v28 = vpop.f32.mrb[1].mxu1 }
  0xfb   : > { %v651_v29 = vadd.f32 %v650_v27, %v649_v24  ;;  %v663_v30 = vadd.f32 %v662_v28, %v661_v25  ;;  %v652_v31 = vpop.f32.mrb[2].mxu0  ;;  %v664_v32 = vpop.f32.mrb[2].mxu1 }
  0xfc   : > { %v653_v33 = vpop.f32.mrb[3].mxu0  ;;  %v665_v34 = vpop.f32.mrb[3].mxu1 }
  0xfd   : > { %v396_v35 = vadd.f32 %v651_v29, %v581_v26  ;;  %v412_v36 = vadd.f32 %v663_v30, %v581_v26  ;;  %v654_v37 = vadd.f32 %v653_v33, %v652_v31  ;;  %v666_v38 = vadd.f32 %v665_v34, %v664_v32 }
  0xff   : > { %v434_v39 = vmin.f32 %v396_v35, 0.0  ;;  %v438_v40 = vmin.f32 %v412_v36, 0.0  ;;  %v399_v41 = vadd.f32 %v654_v37, %v581_v26  ;;  %v844_v42 = vadd.f32 %v666_v38, %v581_v26 }
 0x100   : > { %vm426_vm0 = vcmp.gt.f32.partialorder %v396_v35, 0.0  ;;  %vm430_vm2 = vcmp.gt.f32.partialorder %v412_v36, 0.0 }
 0x101   : > { %v442_v43 = vmul.f32 1.442695, %v434_v39  ;;  %v450_v44 = vmul.f32 1.442695, %v438_v40  ;;  %v655_v45 = vpop.f32.mrb[4].mxu0  ;;  %v667_v46 = vpop.f32.mrb[4].mxu1 }
 0x102   : > { %v435_v47 = vmin.f32 %v399_v41, 0.0  ;;  %v439_v48 = vmin.f32 %v844_v42, 0.0  ;;  %v656_v49 = vpop.f32.mrb[5].mxu0  ;;  %v668_v50 = vpop.f32.mrb[5].mxu1  ;;  %vm427_vm3 = vcmp.gt.f32.partialorder %v399_v41, 0.0  ;;  %vm431_vm4 = vcmp.gt.f32.partialorder %v844_v42, 0.0 }
 0x103   : > { %725 = vpow2.f32 %v442_v43  ;;  %v657_v51 = vadd.f32 %v656_v49, %v655_v45  ;;  %v669_v52 = vadd.f32 %v668_v50, %v667_v46  ;;  %v658_v53 = vpop.f32.mrb[6].mxu0  ;;  %v670_v54 = vpop.f32.mrb[6].mxu1 }
 0x104   : > { %727 = vpow2.f32 %v450_v44  ;;  %v444_v55 = vmul.f32 1.442695, %v435_v47  ;;  %v452_v56 = vmul.f32 1.442695, %v439_v48  ;;  %v659_v57 = vpop.f32.mrb[7].mxu0  ;;  %v671_v58 = vpop.f32.mrb[7].mxu1 }
 0x105   : > { %v404_v59 = vadd.f32 %v657_v51, %v581_v26  ;;  %v420_v60 = vadd.f32 %v669_v52, %v581_v26  ;;  %v660_v61 = vadd.f32 %v659_v57, %v658_v53  ;;  %v672_v62 = vadd.f32 %v671_v58, %v670_v54 }
 0x106   : > { %729 = vpow2.f32 %v444_v55 }
 0x107   : > { %731 = vpow2.f32 %v452_v56  ;;  %v436_v63 = vmin.f32 %v404_v59, 0.0  ;;  %v440_v0 = vmin.f32 %v420_v60, 0.0  ;;  %v407_v1 = vadd.f32 %v660_v61, %v581_v26 }
 0x108   : > { %v423_v2 = vadd.f32 %v672_v62, %v581_v26  ;;  %vm428_vm5 = vcmp.gt.f32.partialorder %v404_v59, 0.0  ;;  %vm432_vm6 = vcmp.gt.f32.partialorder %v420_v60, 0.0 }
 0x109   : > { %v446_v3 = vmul.f32 1.442695, %v436_v63  ;;  %v454_v4 = vmul.f32 1.442695, %v440_v0  ;;  %v437_v5 = vmin.f32 %v407_v1, 0.0  ;;  %vm429_vm7 = vcmp.gt.f32.partialorder %v407_v1, 0.0 }
 0x10a   : > { %v441_v6 = vmin.f32 %v423_v2, 0.0  ;;  %vm433_vm8 = vcmp.gt.f32.partialorder %v423_v2, 0.0 }
 0x10b   : > { %733 = vpow2.f32 %v446_v3  ;;  %v448_v7 = vmul.f32 1.442695, %v437_v5 }
 0x10c   : > { %735 = vpow2.f32 %v454_v4  ;;  %v456_v9 = vmul.f32 1.442695, %v441_v6 }
 0x10d   : > { %v726_v8 = vpop.eup %725  ;;  %737 = vpow2.f32 %v448_v7 }
 0x10e   : > { %v728_v10 = vpop.eup %727  ;;  %v606_v11 = vadd.f32 -1.0, %v726_v8  ;;  %739 = vpow2.f32 %v456_v9 }
 0x10f   : > { %v610_v12 = vadd.f32 -1.0, %v728_v10 }
 0x110   : > { %v730_v13 = vpop.eup %729  ;;  %v466_v14 = vsel %vm426_vm0, %v396_v35, %v606_v11 }
 0x111   : > { %v732_v15 = vpop.eup %731  ;;  %v625_v16 = vpack.c.bf16 %v466_v14, %v466_v14  ;;  %v470_v17 = vsel %vm430_vm2, %v412_v36, %v610_v12  ;;  %v607_v18 = vadd.f32 -1.0, %v730_v13 }
 0x112   : > { %v629_v19 = vpack.c.bf16 %v470_v17, %v470_v17  ;;  %v611_v20 = vadd.f32 -1.0, %v732_v15 }
 0x113   : > { %507 = vst.msk [vmem:[%s851_s4] sm:$0xf] %vm506_vm1, %v625_v16  ;;  %v467_v21 = vsel %vm427_vm3, %v399_v41, %v607_v18 }
 0x114   : > { %511 = vst.msk [vmem:[%s851_s4 + $0x10] sm:$0xf] %vm506_vm1, %v629_v19  ;;  %v626_v22 = vpack.c.bf16 %v467_v21, %v467_v21  ;;  %v471_v23 = vsel %vm431_vm4, %v844_v42, %v611_v20 }
 0x115   : > { %v734_v24 = vpop.eup %733  ;;  %v630_v25 = vpack.c.bf16 %v471_v23, %v471_v23 }
 0x116   : > { %v736_v26 = vpop.eup %735  ;;  %508 = vst.msk [vmem:[%s851_s4 + $0x4] sm:$0xf] %vm506_vm1, %v626_v22  ;;  %v608_v27 = vadd.f32 -1.0, %v734_v24 }
 0x117   : > { %512 = vst.msk [vmem:[%s851_s4 + $0x14] sm:$0xf] %vm506_vm1, %v630_v25  ;;  %v612_v28 = vadd.f32 -1.0, %v736_v26  ;;  %v738_v29 = vpop.eup %737 }
 0x118   : > { %v468_v30 = vsel %vm428_vm5, %v404_v59, %v608_v27  ;;  %v740_v31 = vpop.eup %739  ;;  %v609_v34 = vadd.f32 -1.0, %v738_v29 }
 0x119   : > { %v627_v32 = vpack.c.bf16 %v468_v30, %v468_v30  ;;  %v472_v33 = vsel %vm432_vm6, %v420_v60, %v612_v28  ;;  %v613_v36 = vadd.f32 -1.0, %v740_v31 }
 0x11a   : > { %v631_v35 = vpack.c.bf16 %v472_v33, %v472_v33  ;;  %v469_v37 = vsel %vm429_vm7, %v407_v1, %v609_v34 }
 0x11b   : > { %509 = vst.msk [vmem:[%s851_s4 + $0x8] sm:$0xf] %vm506_vm1, %v627_v32  ;;  %v628_v38 = vpack.c.bf16 %v469_v37, %v469_v37  ;;  %v473_v39 = vsel %vm433_vm8, %v423_v2, %v613_v36 }
 0x11c   : > { %513 = vst.msk [vmem:[%s851_s4 + $0x18] sm:$0xf] %vm506_vm1, %v631_v35  ;;  %v632_v40 = vpack.c.bf16 %v473_v39, %v473_v39 }
 0x11d   : > { %510 = vst.msk [vmem:[%s851_s4 + $0xc] sm:$0xf] %vm506_vm1, %v628_v38 }
 0x11e   : > { %514 = vst.msk [vmem:[%s851_s4 + $0x1c] sm:$0xf] %vm506_vm1, %v632_v40 }
 0x11f PF: > { %s13_s12 = sadd.s32 1, %s747_s12  }
 0x120   : > { %p10_p4 = scmp.ge.s32.totalorder %s13_s12, 4  }
 0x122   :  { %12 = sbr.rel (!%p10_p4) target bundleno = 1 (0x1), region = 62 }

// kernel: ddqn_forward.4
= control target key start
LH: loop header
LB: loop body
LE: loop exit
PB: predicated region body
PF: predicated region fallthrough
CT: control target
= control target key end

     0   :  { %vm404_vm1 = vcmask 519168   ;;  %s677_s1 = inlined_call_operand.vmem [shape: bf16[512,64], index: 1, kind: input, shape index: {}]   ;;  %s678_s0 = inlined_call_operand.vmem [shape: bf16[16,512], index: 0, kind: input, shape index: {}]   ;;  %s679_s2 = inlined_call_operand.vmem [shape: f32[1,64], index: 2, kind: input, shape index: {}]   ;;  %s680_s3 = inlined_call_operand.vmem [shape: bf16[16,64], index: 3, kind: output, shape index: {}]  }
   0x1   :  { %v498_v0 = vld [vmem:[%s677_s1 + $0x40] sm:$0xff]   ;;  %v502_v4 = vld [vmem:[%s677_s1 + $0x48] sm:$0xff]   ;;  %v506_v8 = vld [vmem:[%s677_s1 + $0x50] sm:$0xff]  }
   0x2   :  { %v499_v1 = vld [vmem:[%s677_s1 + $0xc0] sm:$0xff]   ;;  %454 = vmatprep.subr.bf16.mxu0 %v498_v0  ;;  %v503_v5 = vld [vmem:[%s677_s1 + $0xc8] sm:$0xff]   ;;  %v507_v9 = vld [vmem:[%s677_s1 + $0xd0] sm:$0xff]  }
   0x3   :  { %v500_v2 = vld [vmem:[%s677_s1] sm:$0xff]   ;;  %476 = vmatprep.subr.bf16.mxu1 %v499_v1  ;;  %v504_v6 = vld [vmem:[%s677_s1 + $0x8] sm:$0xff]   ;;  %v508_v10 = vld [vmem:[%s677_s1 + $0x10] sm:$0xff]  }
   0x4   :  { %v501_v3 = vld [vmem:[%s677_s1 + $0x80] sm:$0xff]   ;;  %455 = vmatpush3.bf16.msra.mxu0 %v500_v2  ;;  %v505_v7 = vld [vmem:[%s677_s1 + $0x88] sm:$0xff]   ;;  %v509_v11 = vld [vmem:[%s677_s1 + $0x90] sm:$0xff]  }
   0x5   :  { %477 = vmatpush3.bf16.msra.mxu1 %v501_v3  ;;  %456 = vmatprep.subr.bf16.mxu0 %v502_v4  ;;  %v510_v12 = vld [vmem:[%s677_s1 + $0x58] sm:$0xff]   ;;  %v514_v16 = vld [vmem:[%s677_s1 + $0x60] sm:$0xff]   ;;  %v518_v20 = vld [vmem:[%s677_s1 + $0x68] sm:$0xff]  }
   0x6   :  { %478 = vmatprep.subr.bf16.mxu1 %v503_v5  ;;  %v511_v13 = vld [vmem:[%s677_s1 + $0xd8] sm:$0xff]   ;;  %v515_v17 = vld [vmem:[%s677_s1 + $0xe0] sm:$0xff]   ;;  %v519_v21 = vld [vmem:[%s677_s1 + $0xe8] sm:$0xff]  }
   0x7   :  { %v512_v14 = vld [vmem:[%s677_s1 + $0x18] sm:$0xff]   ;;  %v516_v18 = vld [vmem:[%s677_s1 + $0x20] sm:$0xff]   ;;  %v520_v22 = vld [vmem:[%s677_s1 + $0x28] sm:$0xff]  }
   0x8   :  { %457 = vmatpush3.bf16.msra.mxu0 %v504_v6  ;;  %v513_v15 = vld [vmem:[%s677_s1 + $0x98] sm:$0xff]   ;;  %v517_v19 = vld [vmem:[%s677_s1 + $0xa0] sm:$0xff]   ;;  %v521_v23 = vld [vmem:[%s677_s1 + $0xa8] sm:$0xff]  }
   0x9   :  { %479 = vmatpush3.bf16.msra.mxu1 %v505_v7  ;;  %458 = vmatprep.subr.bf16.mxu0 %v506_v8  ;;  %v522_v24 = vld [vmem:[%s677_s1 + $0x70] sm:$0xff]   ;;  %v526_v28 = vld [vmem:[%s677_s1 + $0x78] sm:$0xff]   ;;  %v411_v38 = vld [vmem:[%s679_s2] ss:$0 sm:$0xff] }
   0xa   :  { %480 = vmatprep.subr.bf16.mxu1 %v507_v9  ;;  %v523_v25 = vld [vmem:[%s677_s1 + $0xf0] sm:$0xff]   ;;  %v527_v29 = vld [vmem:[%s677_s1 + $0xf8] sm:$0xff]  }
   0xb   :  { %v524_v26 = vld [vmem:[%s677_s1 + $0x30] sm:$0xff]   ;;  %v528_v30 = vld [vmem:[%s677_s1 + $0x38] sm:$0xff]  }
   0xc   :  { %459 = vmatpush3.bf16.msra.mxu0 %v508_v10  ;;  %v525_v27 = vld [vmem:[%s677_s1 + $0xb0] sm:$0xff]   ;;  %v529_v31 = vld [vmem:[%s677_s1 + $0xb8] sm:$0xff]  }
   0xd   :  { %481 = vmatpush3.bf16.msra.mxu1 %v509_v11  ;;  %460 = vmatprep.subr.bf16.mxu0 %v510_v12  ;;  %v530_v32 = vld [vmem:[%s678_s0] ss:$16 sps:$4 sm:$0xff]   ;;  %v532_v33 = vld [vmem:[%s678_s0 + $0x4] ss:$16 sps:$4 sm:$0xff]   ;;  %v533_v34 = vld [vmem:[%s678_s0 + $0x8] ss:$16 sps:$4 sm:$0xff]  }
   0xe   :  { %482 = vmatprep.subr.bf16.mxu1 %v511_v13  ;;  %v535_v35 = vld [vmem:[%s678_s0 + $0xc] ss:$16 sps:$4 sm:$0xff]   ;;  %334 = vmatprep.mubr.bf16.mxu0 %v532_v33 }
   0xf   :  { %375 = vmatprep.mubr.bf16.mxu1 %v535_v35 }
  0x10   :  { %461 = vmatpush3.bf16.msra.mxu0 %v512_v14 }
  0x11   :  { %483 = vmatpush3.bf16.msra.mxu1 %v513_v15  ;;  %462 = vmatprep.subr.bf16.mxu0 %v514_v16 }
  0x12   :  { %484 = vmatprep.subr.bf16.mxu1 %v515_v17 }
  0x14   :  { %463 = vmatpush3.bf16.msra.mxu0 %v516_v18 }
  0x15   :  { %485 = vmatpush3.bf16.msra.mxu1 %v517_v19  ;;  %464 = vmatprep.subr.bf16.mxu0 %v518_v20 }
  0x16   :  { %486 = vmatprep.subr.bf16.mxu1 %v519_v21 }
  0x18   :  { %465 = vmatpush3.bf16.msra.mxu0 %v520_v22 }
  0x19   :  { %487 = vmatpush3.bf16.msra.mxu1 %v521_v23  ;;  %466 = vmatprep.subr.bf16.mxu0 %v522_v24 }
  0x1a   :  { %488 = vmatprep.subr.bf16.mxu1 %v523_v25 }
  0x1c   :  { %467 = vmatpush3.bf16.msra.mxu0 %v524_v26 }
  0x1d   :  { %489 = vmatpush3.bf16.msra.mxu1 %v525_v27  ;;  %468 = vmatprep.subr.bf16.mxu0 %v526_v28 }
  0x1e   :  { %490 = vmatprep.subr.bf16.mxu1 %v527_v29 }
  0x20   :  { %469 = vmatpush3.bf16.msra.mxu0 %v528_v30 }
  0x21   :  { %491 = vmatpush3.bf16.msra.mxu1 %v529_v31 }
  0x23   :  { %335 = vmatmul.mubr.bf16.vlgmr.msra.gmra.mrb[0].mxu0 %v530_v32 }
  0x24   :  { %376 = vmatmul.mubr.bf16.vlgmr.msra.gmra.mrb[0].mxu1 %v533_v34 }
  0xf6   :  { %v470_v36 = vpop.f32.mrb[0].mxu0 }
  0xf7   :  { %v492_v37 = vpop.f32.mrb[0].mxu1  ;;  %v471_v39 = vpop.f32.mrb[1].mxu0 }
  0xf8   :  { %v472_v40 = vadd.f32 %v471_v39, %v470_v36  ;;  %v493_v41 = vpop.f32.mrb[1].mxu1  ;;  %v473_v42 = vpop.f32.mrb[2].mxu0 }
  0xf9   :  { %v494_v43 = vadd.f32 %v493_v41, %v492_v37  ;;  %v495_v44 = vpop.f32.mrb[2].mxu1  ;;  %v474_v45 = vpop.f32.mrb[3].mxu0 }
  0xfa   :  { %v337_v46 = vadd.f32 %v472_v40, %v411_v38  ;;  %v475_v47 = vadd.f32 %v474_v45, %v473_v42  ;;  %v496_v48 = vpop.f32.mrb[3].mxu1 }
  0xfb   :  { %v497_v49 = vadd.f32 %v496_v48, %v495_v44 }
  0xfc   :  { %v378_v50 = vadd.f32 %v494_v43, %v337_v46  ;;  %v340_v51 = vadd.f32 %v475_v47, %v411_v38 }
  0xfe   :  { %v386_v52 = vmin.f32 %v378_v50, 0.0  ;;  %v381_v53 = vadd.f32 %v497_v49, %v340_v51  ;;  %vm384_vm0 = vcmp.gt.f32.partialorder %v378_v50, 0.0 }
 0x100   :  { %v388_v54 = vmul.f32 1.442695, %v386_v52  ;;  %v387_v55 = vmin.f32 %v381_v53, 0.0  ;;  %vm385_vm2 = vcmp.gt.f32.partialorder %v381_v53, 0.0 }
 0x102   :  { %536 = vpow2.f32 %v388_v54  ;;  %v390_v56 = vmul.f32 1.442695, %v387_v55 }
 0x104   :  { %538 = vpow2.f32 %v390_v56 }
 0x10c   :  { %v537_v57 = vpop.eup %536 }
 0x10d   :  { %v448_v58 = vadd.f32 -1.0, %v537_v57 }
 0x10e   :  { %v539_v59 = vpop.eup %538 }
 0x10f   :  { %v394_v60 = vsel %vm384_vm0, %v378_v50, %v448_v58  ;;  %v449_v61 = vadd.f32 -1.0, %v539_v59 }
 0x110   :  { %v452_v62 = vpack.c.bf16 %v394_v60, %v394_v60 }
 0x111   :  { %v395_v63 = vsel %vm385_vm2, %v381_v53, %v449_v61 }
 0x112   :  { %405 = vst.msk [vmem:[%s680_s3] sm:$0xf] %vm404_vm1, %v452_v62  ;;  %v453_v0 = vpack.c.bf16 %v395_v63, %v395_v63 }
 0x114   :  { %406 = vst.msk [vmem:[%s680_s3 + $0x4] sm:$0xf] %vm404_vm1, %v453_v0 }

// kernel: ddqn_forward.5
= control target key start
LH: loop header
LB: loop body
LE: loop exit
PB: predicated region body
PF: predicated region fallthrough
CT: control target
= control target key end

     0   :  { %v1287_v27 = vmov 0   ;;  %vm346_vm2 = vcmask 523264   ;;  %s1654_s1 = inlined_call_operand.vmem [shape: bf16[256,64], index: 1, kind: input, shape index: {}]   ;;  %s1655_s0 = inlined_call_operand.vmem [shape: bf16[16,256], index: 0, kind: input, shape index: {}]   ;;  %s1656_s3 = inlined_call_operand.vmem [shape: bf16[64,512], index: 3, kind: input, shape index: {}]   ;;  %s1657_s5 = inlined_call_operand.vmem [shape: bf16[512,256], index: 5, kind: input, shape index: {}]   ;;  %s1658_s2 = inlined_call_operand.vmem [shape: f32[1,64], index: 2, kind: input, shape index: {}]   ;;  %s1659_s4 = inlined_call_operand.vmem [shape: f32[1,512], index: 4, kind: input, shape index: {}]   ;;  %s1660_s6 = inlined_call_operand.vmem [shape: f32[1,256], index: 6, kind: input, shape index: {}]   ;;  %s1661_s7 = inlined_call_operand.vmem [shape: f32[16,128], index: 7, kind: output, shape index: {}]  }
   0x1   :  { %v1128_v0 = vld [vmem:[%s1654_s1 + $0x40] sm:$0xff]   ;;  %v1130_v2 = vld [vmem:[%s1654_s1 + $0x48] sm:$0xff]   ;;  %v1132_v4 = vld [vmem:[%s1654_s1 + $0x50] sm:$0xff]   ;;  %382 = vmatprep.mubr.bf16.mxu1 %v1287_v27 }
   0x2   :  { %v1129_v1 = vld [vmem:[%s1654_s1] sm:$0xff]   ;;  %1097 = vmatprep.subr.bf16.mxu0 %v1128_v0  ;;  %v1131_v3 = vld [vmem:[%s1654_s1 + $0x8] sm:$0xff]   ;;  %v1133_v5 = vld [vmem:[%s1654_s1 + $0x10] sm:$0xff]  }
   0x3   :  { %1098 = vmatpush3.bf16.msra.mxu0 %v1129_v1  ;;  %v1134_v6 = vld [vmem:[%s1654_s1 + $0x58] sm:$0xff]   ;;  %v1136_v8 = vld [vmem:[%s1654_s1 + $0x60] sm:$0xff]   ;;  %v1138_v10 = vld [vmem:[%s1654_s1 + $0x68] sm:$0xff]  }
   0x4   :  { %1099 = vmatprep.subr.bf16.mxu0 %v1130_v2  ;;  %v1135_v7 = vld [vmem:[%s1654_s1 + $0x18] sm:$0xff]   ;;  %v1137_v9 = vld [vmem:[%s1654_s1 + $0x20] sm:$0xff]   ;;  %v1139_v12 = vld [vmem:[%s1654_s1 + $0x28] sm:$0xff]  }
   0x5   :  { %v1146_v11 = vld [vmem:[%s1655_s0 + $0x4] ss:$8 sps:$4 sm:$0xff]   ;;  %v1140_v13 = vld [vmem:[%s1654_s1 + $0x70] sm:$0xff]   ;;  %v1142_v15 = vld [vmem:[%s1654_s1 + $0x78] sm:$0xff]  }
   0x6   :  { %206 = vmatprep.mubr.bf16.mxu0 %v1146_v11  ;;  %v1141_v14 = vld [vmem:[%s1654_s1 + $0x30] sm:$0xff]   ;;  %v1143_v16 = vld [vmem:[%s1654_s1 + $0x38] sm:$0xff]   ;;  %v1144_v17 = vld [vmem:[%s1655_s0] ss:$8 sps:$4 sm:$0xff]  }
   0x7   :  { %1100 = vmatpush3.bf16.msra.mxu0 %v1131_v3  ;;  %v1147_v18 = vld [vmem:[%s1656_s3 + $0x4] ss:$16 sps:$4 sm:$0xff]   ;;  %v1149_v19 = vld [vmem:[%s1656_s3] ss:$16 sps:$4 sm:$0xff]   ;;  %v1161_v26 = vld [vmem:[%s1656_s3 + $0xc] ss:$16 sps:$4 sm:$0xff]  }
   0x8   :  { %1101 = vmatprep.subr.bf16.mxu0 %v1132_v4  ;;  %350 = vmatprep.subr.bf16.mxu1 %v1147_v18  ;;  %v1150_v20 = vld [vmem:[%s1656_s3 + $0x24] ss:$16 sps:$4 sm:$0xff]   ;;  %v1152_v21 = vld [vmem:[%s1656_s3 + $0x20] ss:$16 sps:$4 sm:$0xff]   ;;  %v1159_v59 = vld [vmem:[%s1656_s3 + $0x8] ss:$16 sps:$4 sm:$0xff]  }
   0x9   :  { %351 = vmatpush1.bf16.msra.mxu1 %v1149_v19  ;;  %v1153_v22 = vld [vmem:[%s1656_s3 + $0x44] ss:$16 sps:$4 sm:$0xff]   ;;  %v1155_v23 = vld [vmem:[%s1656_s3 + $0x40] ss:$16 sps:$4 sm:$0xff]   ;;  %v1164_v61 = vld [vmem:[%s1656_s3 + $0x2c] ss:$16 sps:$4 sm:$0xff]  }
   0xa   :  { %352 = vmatprep.subr.bf16.mxu1 %v1150_v20  ;;  %v1156_v24 = vld [vmem:[%s1656_s3 + $0x64] ss:$16 sps:$4 sm:$0xff]   ;;  %v1158_v25 = vld [vmem:[%s1656_s3 + $0x60] ss:$16 sps:$4 sm:$0xff]   ;;  %v1162_v62 = vld [vmem:[%s1656_s3 + $0x28] ss:$16 sps:$4 sm:$0xff]  }
   0xb   :  { %1102 = vmatpush3.bf16.msra.mxu0 %v1133_v5  ;;  %v1183_v28 = vld [vmem:[%s1657_s5 + $0x100] ss:$8 sps:$4 sm:$0xff]   ;;  %v1185_v29 = vld [vmem:[%s1657_s5 + $0x104] ss:$8 sps:$4 sm:$0xff]   ;;  %v1189_v30 = vld [vmem:[%s1657_s5 + $0x110] ss:$8 sps:$4 sm:$0xff]  }
   0xc   :  { %1103 = vmatprep.subr.bf16.mxu0 %v1134_v6  ;;  %v1191_v31 = vld [vmem:[%s1657_s5 + $0x114] ss:$8 sps:$4 sm:$0xff]   ;;  %v1195_v32 = vld [vmem:[%s1657_s5 + $0x120] ss:$8 sps:$4 sm:$0xff]   ;;  %v1197_v33 = vld [vmem:[%s1657_s5 + $0x124] ss:$8 sps:$4 sm:$0xff]  }
   0xd   :  { %353 = vmatpush1.bf16.msra.mxu1 %v1152_v21  ;;  %v1201_v34 = vld [vmem:[%s1657_s5 + $0x130] ss:$8 sps:$4 sm:$0xff]   ;;  %v1203_v35 = vld [vmem:[%s1657_s5 + $0x134] ss:$8 sps:$4 sm:$0xff]   ;;  %v1207_v36 = vld [vmem:[%s1657_s5 + $0x140] ss:$8 sps:$4 sm:$0xff]  }
   0xe   :  { %354 = vmatprep.subr.bf16.mxu1 %v1153_v22  ;;  %v1209_v37 = vld [vmem:[%s1657_s5 + $0x144] ss:$8 sps:$4 sm:$0xff]   ;;  %v1213_v38 = vld [vmem:[%s1657_s5 + $0x150] ss:$8 sps:$4 sm:$0xff]   ;;  %v1215_v39 = vld [vmem:[%s1657_s5 + $0x154] ss:$8 sps:$4 sm:$0xff]  }
   0xf   :  { %1104 = vmatpush3.bf16.msra.mxu0 %v1135_v7  ;;  %v986_v41 = vld [vmem:[%s1658_s2] ss:$0 sm:$0xff]  ;;  %v1167_v63 = vld [vmem:[%s1656_s3 + $0x4c] ss:$16 sps:$4 sm:$0xff]   ;;  %v1165_v0 = vld [vmem:[%s1656_s3 + $0x48] ss:$16 sps:$4 sm:$0xff]  }
  0x10   :  { %1105 = vmatprep.subr.bf16.mxu0 %v1136_v8  ;;  %v1170_v1 = vld [vmem:[%s1656_s3 + $0x6c] ss:$16 sps:$4 sm:$0xff]   ;;  %v1168_v2 = vld [vmem:[%s1656_s3 + $0x68] ss:$16 sps:$4 sm:$0xff]  }
  0x11   :  { %355 = vmatpush1.bf16.msra.mxu1 %v1155_v23  ;;  %v1173_v3 = vld [vmem:[%s1657_s5 + $0x4] ss:$8 sps:$4 sm:$0xff]   ;;  %v1171_v4 = vld [vmem:[%s1657_s5] ss:$8 sps:$4 sm:$0xff]   ;;  %v1176_v5 = vld [vmem:[%s1657_s5 + $0x14] ss:$8 sps:$4 sm:$0xff]  }
  0x12   :  { %356 = vmatprep.subr.bf16.mxu1 %v1156_v24  ;;  %v1174_v6 = vld [vmem:[%s1657_s5 + $0x10] ss:$8 sps:$4 sm:$0xff]   ;;  %v1179_v7 = vld [vmem:[%s1657_s5 + $0x24] ss:$8 sps:$4 sm:$0xff]   ;;  %v1177_v8 = vld [vmem:[%s1657_s5 + $0x20] ss:$8 sps:$4 sm:$0xff]  }
  0x13   :  { %1106 = vmatpush3.bf16.msra.mxu0 %v1137_v9  ;;  %v1182_v9 = vld [vmem:[%s1657_s5 + $0x34] ss:$8 sps:$4 sm:$0xff]   ;;  %v1188_v11 = vld [vmem:[%s1657_s5 + $0x44] ss:$8 sps:$4 sm:$0xff]   ;;  %v1204_v18 = vld [vmem:[%s1657_s5 + $0x70] ss:$8 sps:$4 sm:$0xff]  }
  0x14   :  { %1107 = vmatprep.subr.bf16.mxu0 %v1138_v10  ;;  %v1180_v10 = vld [vmem:[%s1657_s5 + $0x30] ss:$8 sps:$4 sm:$0xff]   ;;  %v1212_v19 = vld [vmem:[%s1657_s5 + $0x84] ss:$8 sps:$4 sm:$0xff]   ;;  %v1210_v20 = vld [vmem:[%s1657_s5 + $0x80] ss:$8 sps:$4 sm:$0xff]  }
  0x15   :  { %357 = vmatpush1.bf16.msra.mxu1 %v1158_v25  ;;  %v1218_v21 = vld [vmem:[%s1657_s5 + $0x94] ss:$8 sps:$4 sm:$0xff]   ;;  %v1216_v22 = vld [vmem:[%s1657_s5 + $0x90] ss:$8 sps:$4 sm:$0xff]   ;;  %v1221_v23 = vld [vmem:[%s1657_s5 + $0x164] ss:$8 sps:$4 sm:$0xff]  }
  0x16   :  { %393 = vmatprep.subr.bf16.mxu1 %v1161_v26  ;;  %v1219_v24 = vld [vmem:[%s1657_s5 + $0x160] ss:$8 sps:$4 sm:$0xff]   ;;  %v1224_v25 = vld [vmem:[%s1657_s5 + $0xa4] ss:$8 sps:$4 sm:$0xff]  }
  0x17   :  { %1108 = vmatpush3.bf16.msra.mxu0 %v1139_v12  ;;  %v1186_v12 = vld [vmem:[%s1657_s5 + $0x40] ss:$8 sps:$4 sm:$0xff]  }
  0x18   :  { %1109 = vmatprep.subr.bf16.mxu0 %v1140_v13  ;;  %v1194_v13 = vld [vmem:[%s1657_s5 + $0x54] ss:$8 sps:$4 sm:$0xff]   ;;  %v1222_v26 = vld [vmem:[%s1657_s5 + $0xa0] ss:$8 sps:$4 sm:$0xff]  }
  0x1b   :  { %1110 = vmatpush3.bf16.msra.mxu0 %v1141_v14  ;;  %v1192_v14 = vld [vmem:[%s1657_s5 + $0x50] ss:$8 sps:$4 sm:$0xff]  }
  0x1c   :  { %1111 = vmatprep.subr.bf16.mxu0 %v1142_v15  ;;  %v1200_v15 = vld [vmem:[%s1657_s5 + $0x64] ss:$8 sps:$4 sm:$0xff]  }
  0x1f   :  { %1112 = vmatpush3.bf16.msra.mxu0 %v1143_v16  ;;  %v1198_v16 = vld [vmem:[%s1657_s5 + $0x60] ss:$8 sps:$4 sm:$0xff]  }
  0x20   :  { %927 = vmatprep.subr.bf16.mxu0 %v1185_v29  ;;  %v1230_v29 = vld [vmem:[%s1657_s5 + $0xb4] ss:$8 sps:$4 sm:$0xff]  }
  0x22   :  { %207 = vmatmul.mubr.bf16.vlgmr.msra.gmra.mrb[0].mxu0 %v1144_v17  ;;  %v1206_v17 = vld [vmem:[%s1657_s5 + $0x74] ss:$8 sps:$4 sm:$0xff]  }
  0x23   :  { %928 = vmatpush1.bf16.msra.mxu0 %v1183_v28  ;;  %v1225_v28 = vld [vmem:[%s1657_s5 + $0x170] ss:$8 sps:$4 sm:$0xff]  }
  0x24   :  { %929 = vmatprep.subr.bf16.mxu0 %v1191_v31  ;;  %v1233_v31 = vld [vmem:[%s1657_s5 + $0x184] ss:$8 sps:$4 sm:$0xff]  }
  0x27   :  { %930 = vmatpush1.bf16.msra.mxu0 %v1189_v30  ;;  %v1228_v30 = vld [vmem:[%s1657_s5 + $0xb0] ss:$8 sps:$4 sm:$0xff]  }
  0x28   :  { %931 = vmatprep.subr.bf16.mxu0 %v1197_v33  ;;  %v1236_v33 = vld [vmem:[%s1657_s5 + $0xc4] ss:$8 sps:$4 sm:$0xff]  }
  0x2b   :  { %932 = vmatpush1.bf16.msra.mxu0 %v1195_v32  ;;  %v1231_v32 = vld [vmem:[%s1657_s5 + $0x180] ss:$8 sps:$4 sm:$0xff]  }
  0x2c   :  { %933 = vmatprep.subr.bf16.mxu0 %v1203_v35  ;;  %v1239_v35 = vld [vmem:[%s1657_s5 + $0x194] ss:$8 sps:$4 sm:$0xff]  }
  0x2f   :  { %934 = vmatpush1.bf16.msra.mxu0 %v1201_v34  ;;  %v1234_v34 = vld [vmem:[%s1657_s5 + $0xc0] ss:$8 sps:$4 sm:$0xff]  }
  0x30   :  { %935 = vmatprep.subr.bf16.mxu0 %v1209_v37  ;;  %v1242_v37 = vld [vmem:[%s1657_s5 + $0xd4] ss:$8 sps:$4 sm:$0xff]  }
  0x33   :  { %936 = vmatpush1.bf16.msra.mxu0 %v1207_v36  ;;  %v1237_v36 = vld [vmem:[%s1657_s5 + $0x190] ss:$8 sps:$4 sm:$0xff]  }
  0x34   :  { %937 = vmatprep.subr.bf16.mxu0 %v1215_v39  ;;  %v1245_v39 = vld [vmem:[%s1657_s5 + $0x1a4] ss:$8 sps:$4 sm:$0xff]  }
  0x37   :  { %938 = vmatpush1.bf16.msra.mxu0 %v1213_v38  ;;  %v1240_v38 = vld [vmem:[%s1657_s5 + $0xd0] ss:$8 sps:$4 sm:$0xff]  }
  0x38   :  { %939 = vmatprep.subr.bf16.mxu0 %v1221_v23 }
  0x3b   :  { %940 = vmatpush1.bf16.msra.mxu0 %v1219_v24 }
  0xf5   :  { %v1113_v40 = vpop.f32.mrb[0].mxu0 }
  0xf6   :  { %v1114_v42 = vpop.f32.mrb[1].mxu0 }
  0xf7   :  { %v1115_v43 = vadd.f32 %v1114_v42, %v1113_v40  ;;  %v1116_v44 = vpop.f32.mrb[2].mxu0  ;;  %v1243_v40 = vld [vmem:[%s1657_s5 + $0x1a0] ss:$8 sps:$4 sm:$0xff]  }
  0xf8   :  { %v1117_v45 = vpop.f32.mrb[3].mxu0  ;;  %v1246_v42 = vld [vmem:[%s1657_s5 + $0xe0] ss:$8 sps:$4 sm:$0xff]  }
  0xf9   :  { %v209_v46 = vadd.f32 %v1115_v43, %v986_v41  ;;  %v1118_v47 = vadd.f32 %v1117_v45, %v1116_v44  ;;  %v1251_v43 = vld [vmem:[%s1657_s5 + $0x1b4] ss:$8 sps:$4 sm:$0xff]   ;;  %v1249_v44 = vld [vmem:[%s1657_s5 + $0x1b0] ss:$8 sps:$4 sm:$0xff]  }
  0xfa   :  { %v1254_v45 = vld [vmem:[%s1657_s5 + $0xf4] ss:$8 sps:$4 sm:$0xff]  }
  0xfb   :  { %v217_v48 = vmin.f32 %v209_v46, 0.0  ;;  %v212_v49 = vadd.f32 %v1118_v47, %v986_v41  ;;  %vm215_vm0 = vcmp.gt.f32.partialorder %v209_v46, 0.0  ;;  %v1248_v41 = vld [vmem:[%s1657_s5 + $0xe4] ss:$8 sps:$4 sm:$0xff]  }
  0xfc   :  { %v1257_v47 = vld [vmem:[%s1657_s5 + $0x1c4] ss:$8 sps:$4 sm:$0xff]  }
  0xfd   :  { %v219_v50 = vmul.f32 1.442695, %v217_v48  ;;  %v218_v51 = vmin.f32 %v212_v49, 0.0  ;;  %vm216_vm1 = vcmp.gt.f32.partialorder %v212_v49, 0.0  ;;  %v1255_v48 = vld [vmem:[%s1657_s5 + $0x1c0] ss:$8 sps:$4 sm:$0xff]  }
  0xff   :  { %1267 = vpow2.f32 %v219_v50  ;;  %v221_v52 = vmul.f32 1.442695, %v218_v51  ;;  %v1258_v50 = vld [vmem:[%s1657_s5 + $0x1d0] ss:$8 sps:$4 sm:$0xff]   ;;  %v1263_v51 = vld [vmem:[%s1657_s5 + $0x1e4] ss:$8 sps:$4 sm:$0xff]  }
 0x101   :  { %1269 = vpow2.f32 %v221_v52  ;;  %v1261_v52 = vld [vmem:[%s1657_s5 + $0x1e0] ss:$8 sps:$4 sm:$0xff]  }
 0x109   :  { %v1268_v53 = vpop.eup %1267 }
 0x10a   :  { %v1005_v54 = vadd.f32 -1.0, %v1268_v53  ;;  %v1264_v53 = vld [vmem:[%s1657_s5 + $0x1f0] ss:$8 sps:$4 sm:$0xff]  }
 0x10b   :  { %v1270_v55 = vpop.eup %1269 }
 0x10c   :  { %v1006_v56 = vadd.f32 -1.0, %v1270_v55  ;;  %v225_v57 = vsel %vm215_vm0, %v209_v46, %v1005_v54  ;;  %v1252_v46 = vld [vmem:[%s1657_s5 + $0xf0] ss:$8 sps:$4 sm:$0xff]   ;;  %v1266_v54 = vld [vmem:[%s1657_s5 + $0x1f4] ss:$8 sps:$4 sm:$0xff]   ;;  %v246_v55 = vlaneseq }
 0x10e   :  { %v226_v58 = vsel %vm216_vm1, %v212_v49, %v1006_v56  ;;  %v1260_v49 = vld [vmem:[%s1657_s5 + $0x1d4] ss:$8 sps:$4 sm:$0xff]   ;;  %v1627_v56 = vshrl.u32 %v246_v55, 7 }
 0x10f   :  { %v227_v60 = vpack.c.bf16 %v226_v58, %v225_v57  ;;  %v244_v58 = vld [vmem:[%s1659_s4] sm:$0xf] }
 0x110   :  { %v248_v57 = vsub.s32 0, %v1627_v56 }
 0x111   :  { %1023 = vmatmul.mubr.msk.bf16.vlgmr.msra.gmra.mrb[0].mxu1 %vm346_vm2, %v227_v60 }
 0x112   :  { %394 = vmatpush1.bf16.msra.mxu1 %v1159_v59  ;;  %425 = vmatprep.mubr.bf16.mxu1 %v1287_v27  ;;  %v1227_v27 = vld [vmem:[%s1657_s5 + $0x174] ss:$8 sps:$4 sm:$0xff]   ;;  %v252_v59 = vsub.s32 1, %v1627_v56 }
 0x113   :  { %395 = vmatprep.subr.bf16.mxu1 %v1164_v61  ;;  %941 = vmatprep.subr.bf16.mxu0 %v1227_v27 }
 0x114   :  { %942 = vmatpush1.bf16.msra.mxu0 %v1225_v28  ;;  %v253_v61 = vrot.slane %v244_v58, %v252_v59 }
 0x115   :  { %943 = vmatprep.subr.bf16.mxu0 %v1233_v31 }
 0x116   :  { %396 = vmatpush1.bf16.msra.mxu1 %v1162_v62 }
 0x117   :  { %397 = vmatprep.subr.bf16.mxu1 %v1167_v63 }
 0x118   :  { %944 = vmatpush1.bf16.msra.mxu0 %v1231_v32 }
 0x119   :  { %945 = vmatprep.subr.bf16.mxu0 %v1239_v35 }
 0x11a   :  { %398 = vmatpush1.bf16.msra.mxu1 %v1165_v0 }
 0x11b   :  { %399 = vmatprep.subr.bf16.mxu1 %v1170_v1 }
 0x11c   :  { %946 = vmatpush1.bf16.msra.mxu0 %v1237_v36 }
 0x11d   :  { %947 = vmatprep.subr.bf16.mxu0 %v1245_v39 }
 0x11e   :  { %400 = vmatpush1.bf16.msra.mxu1 %v1168_v2 }
 0x11f   :  { %884 = vmatprep.subr.bf16.mxu1 %v1173_v3 }
 0x120   :  { %948 = vmatpush1.bf16.msra.mxu0 %v1243_v40 }
 0x121   :  { %1024 = vmatmul.mubr.msk.bf16.vlgmr.msra.gmra.mrb[4].mxu1 %vm346_vm2, %v227_v60  ;;  %949 = vmatprep.subr.bf16.mxu0 %v1251_v43  ;;  %v249_v60 = vrot.slane %v244_v58, %v248_v57 }
 0x122   :  { %885 = vmatpush1.bf16.msra.mxu1 %v1171_v4 }
 0x123   :  { %886 = vmatprep.subr.bf16.mxu1 %v1176_v5 }
 0x124   :  { %950 = vmatpush1.bf16.msra.mxu0 %v1249_v44 }
 0x125   :  { %951 = vmatprep.subr.bf16.mxu0 %v1257_v47 }
 0x126   :  { %887 = vmatpush1.bf16.msra.mxu1 %v1174_v6 }
 0x127   :  { %888 = vmatprep.subr.bf16.mxu1 %v1179_v7 }
 0x128   :  { %952 = vmatpush1.bf16.msra.mxu0 %v1255_v48 }
 0x129   :  { %953 = vmatprep.subr.bf16.mxu0 %v1260_v49 }
 0x12a   :  { %889 = vmatpush1.bf16.msra.mxu1 %v1177_v8 }
 0x12b   :  { %890 = vmatprep.subr.bf16.mxu1 %v1182_v9 }
 0x12c   :  { %954 = vmatpush1.bf16.msra.mxu0 %v1258_v50 }
 0x12d   :  { %955 = vmatprep.subr.bf16.mxu0 %v1263_v51 }
 0x12e   :  { %891 = vmatpush1.bf16.msra.mxu1 %v1180_v10 }
 0x12f   :  { %892 = vmatprep.subr.bf16.mxu1 %v1188_v11 }
 0x130   :  { %956 = vmatpush1.bf16.msra.mxu0 %v1261_v52 }
 0x131   :  { %957 = vmatprep.subr.bf16.mxu0 %v1266_v54 }
 0x132   :  { %893 = vmatpush1.bf16.msra.mxu1 %v1186_v12 }
 0x133   :  { %894 = vmatprep.subr.bf16.mxu1 %v1194_v13 }
 0x134   :  { %958 = vmatpush1.bf16.msra.mxu0 %v1264_v53 }
 0x136   :  { %895 = vmatpush1.bf16.msra.mxu1 %v1192_v14  ;;  %v256_v14 = vsub.s32 2, %v1627_v56 }
 0x137   :  { %896 = vmatprep.subr.bf16.mxu1 %v1200_v15  ;;  %v260_v15 = vsub.s32 3, %v1627_v56 }
 0x13a   :  { %897 = vmatpush1.bf16.msra.mxu1 %v1198_v16  ;;  %v257_v16 = vrot.slane %v244_v58, %v256_v14 }
 0x13b   :  { %898 = vmatprep.subr.bf16.mxu1 %v1206_v17  ;;  %v261_v17 = vrot.slane %v244_v58, %v260_v15 }
 0x13e   :  { %899 = vmatpush1.bf16.msra.mxu1 %v1204_v18 }
 0x13f   :  { %900 = vmatprep.subr.bf16.mxu1 %v1212_v19 }
 0x142   :  { %901 = vmatpush1.bf16.msra.mxu1 %v1210_v20 }
 0x143   :  { %902 = vmatprep.subr.bf16.mxu1 %v1218_v21 }
 0x146   :  { %903 = vmatpush1.bf16.msra.mxu1 %v1216_v22 }
 0x147   :  { %904 = vmatprep.subr.bf16.mxu1 %v1224_v25 }
 0x14a   :  { %905 = vmatpush1.bf16.msra.mxu1 %v1222_v26 }
 0x14b   :  { %906 = vmatprep.subr.bf16.mxu1 %v1230_v29 }
 0x14e   :  { %907 = vmatpush1.bf16.msra.mxu1 %v1228_v30 }
 0x14f   :  { %908 = vmatprep.subr.bf16.mxu1 %v1236_v33 }
 0x152   :  { %909 = vmatpush1.bf16.msra.mxu1 %v1234_v34 }
 0x153   :  { %910 = vmatprep.subr.bf16.mxu1 %v1242_v37 }
 0x156   :  { %911 = vmatpush1.bf16.msra.mxu1 %v1240_v38 }
 0x157   :  { %912 = vmatprep.subr.bf16.mxu1 %v1248_v41 }
 0x15a   :  { %913 = vmatpush1.bf16.msra.mxu1 %v1246_v42 }
 0x15b   :  { %914 = vmatprep.subr.bf16.mxu1 %v1254_v45 }
 0x15e   :  { %915 = vmatpush1.bf16.msra.mxu1 %v1252_v46 }
 0x1e4   :  { %v384_v62 = vpop.f32.mrb[0].mxu1 }
 0x1e5   :  { %v385_v63 = vadd.f32 %v384_v62, %v249_v60  ;;  %v386_v0 = vpop.f32.mrb[1].mxu1 }
 0x1e6   :  { %v387_v1 = vadd.f32 %v386_v0, %v253_v61  ;;  %v388_v2 = vpop.f32.mrb[2].mxu1 }
 0x1e7   :  { %v444_v3 = vmin.f32 %v385_v63, 0.0  ;;  %v389_v4 = vadd.f32 %v388_v2, %v249_v60  ;;  %v390_v5 = vpop.f32.mrb[3].mxu1  ;;  %vm436_vm3 = vcmp.gt.f32.partialorder %v385_v63, 0.0 }
 0x1e8   :  { %v445_v6 = vmin.f32 %v387_v1, 0.0  ;;  %v391_v7 = vadd.f32 %v390_v5, %v253_v61  ;;  %vm437_vm4 = vcmp.gt.f32.partialorder %v387_v1, 0.0  ;;  %v552_v5 = vld [vmem:[%s1660_s6] sm:$0x3] }
 0x1e9   :  { %v452_v8 = vmul.f32 1.442695, %v444_v3  ;;  %v448_v9 = vmin.f32 %v389_v4, 0.0  ;;  %vm440_vm5 = vcmp.gt.f32.partialorder %v389_v4, 0.0 }
 0x1ea   :  { %v454_v10 = vmul.f32 1.442695, %v445_v6  ;;  %v449_v11 = vmin.f32 %v391_v7, 0.0  ;;  %vm441_vm6 = vcmp.gt.f32.partialorder %v391_v7, 0.0  ;;  %v557_v6 = vrot.slane %v552_v5, %v248_v57 }
 0x1eb   :  { %1271 = vpow2.f32 %v452_v8  ;;  %v460_v12 = vmul.f32 1.442695, %v448_v9 }
 0x1ec   :  { %1273 = vpow2.f32 %v454_v10  ;;  %v462_v13 = vmul.f32 1.442695, %v449_v11 }
 0x1ed   :  { %1275 = vpow2.f32 %v460_v12 }
 0x1ee   :  { %1277 = vpow2.f32 %v462_v13 }
 0x1f4   :  { %v427_v18 = vpop.f32.mrb[4].mxu1 }
 0x1f5   :  { %v1272_v19 = vpop.eup %1271  ;;  %v428_v20 = vadd.f32 %v427_v18, %v257_v16  ;;  %v429_v21 = vpop.f32.mrb[5].mxu1 }
 0x1f6   :  { %v1274_v22 = vpop.eup %1273  ;;  %v1025_v23 = vadd.f32 -1.0, %v1272_v19  ;;  %v430_v24 = vadd.f32 %v429_v21, %v261_v17  ;;  %v431_v25 = vpop.f32.mrb[6].mxu1 }
 0x1f7   :  { %v1276_v26 = vpop.eup %1275  ;;  %v1026_v27 = vadd.f32 -1.0, %v1274_v22  ;;  %v446_v28 = vmin.f32 %v428_v20, 0.0  ;;  %v432_v29 = vadd.f32 %v431_v25, %v257_v16  ;;  %v433_v30 = vpop.f32.mrb[7].mxu1  ;;  %vm438_vm7 = vcmp.gt.f32.partialorder %v428_v20, 0.0 }
 0x1f8   :  { %v1278_v31 = vpop.eup %1277  ;;  %v1029_v32 = vadd.f32 -1.0, %v1276_v26  ;;  %v447_v33 = vmin.f32 %v430_v24, 0.0  ;;  %v476_v34 = vsel %vm436_vm3, %v385_v63, %v1025_v23  ;;  %v434_v40 = vadd.f32 %v433_v30, %v261_v17 }
 0x1f9   :  { %v1030_v35 = vadd.f32 -1.0, %v1278_v31  ;;  %v456_v36 = vmul.f32 1.442695, %v446_v28  ;;  %v450_v37 = vmin.f32 %v432_v29, 0.0  ;;  %v477_v41 = vsel %vm437_vm4, %v387_v1, %v1026_v27 }
 0x1fa   :  { %v480_v38 = vsel %vm440_vm5, %v389_v4, %v1029_v32  ;;  %v458_v39 = vmul.f32 1.442695, %v447_v33  ;;  %v451_v45 = vmin.f32 %v434_v40, 0.0  ;;  %vm442_vm8 = vcmp.gt.f32.partialorder %v432_v29, 0.0 }
 0x1fb   :  { %v484_v42 = vpack.c.bf16 %v480_v38, %v476_v34  ;;  %1279 = vpow2.f32 %v456_v36  ;;  %v464_v43 = vmul.f32 1.442695, %v450_v37  ;;  %v481_v44 = vsel %vm441_vm6, %v391_v7, %v1030_v35 }
 0x1fc   :  { %1281 = vpow2.f32 %v458_v39  ;;  %v485_v46 = vpack.c.bf16 %v481_v44, %v477_v41  ;;  %v466_v47 = vmul.f32 1.442695, %v451_v45  ;;  %vm439_vm9 = vcmp.gt.f32.partialorder %v430_v24, 0.0 }
 0x1fd   :  { %1283 = vpow2.f32 %v464_v43  ;;  %vm443_vm10 = vcmp.gt.f32.partialorder %v434_v40, 0.0  ;;  %v561_v7 = vrot.slane %v552_v5, %v252_v59 }
 0x1fe   :  { %916 = vmatprep.mubr.bf16.mxu1 %v485_v46  ;;  %1285 = vpow2.f32 %v466_v47 }
 0x1ff   :  { %917 = vmatmul.mubr.bf16.vlgmr.msra.gmra.mrb[8].mxu1 %v484_v42 }
 0x205   :  { %v1280_v48 = vpop.eup %1279 }
 0x206   :  { %v1282_v49 = vpop.eup %1281  ;;  %v1027_v50 = vadd.f32 -1.0, %v1280_v48 }
 0x207   :  { %v1284_v51 = vpop.eup %1283  ;;  %v1028_v53 = vadd.f32 -1.0, %v1282_v49 }
 0x208   :  { %v1031_v52 = vadd.f32 -1.0, %v1284_v51  ;;  %v1286_v54 = vpop.eup %1285  ;;  %v478_v55 = vsel %vm438_vm7, %v428_v20, %v1027_v50 }
 0x209   :  { %v1032_v61 = vadd.f32 -1.0, %v1286_v54  ;;  %v479_v62 = vsel %vm439_vm9, %v430_v24, %v1028_v53 }
 0x20a   :  { %v482_v58 = vsel %vm442_vm8, %v432_v29, %v1031_v52 }
 0x20b   :  { %v486_v60 = vpack.c.bf16 %v482_v58, %v478_v55  ;;  %v483_v63 = vsel %vm443_vm10, %v434_v40, %v1032_v61 }
 0x20c   :  { %v487_v0 = vpack.c.bf16 %v483_v63, %v479_v62 }
 0x20e   :  { %959 = vmatprep.mubr.bf16.mxu0 %v487_v0 }
 0x20f   :  { %960 = vmatmul.mubr.bf16.vlgmr.msra.gmra.mrb[4].mxu0 %v486_v60 }
 0x2d2   :  { %v918_v1 = vpop.f32.mrb[8].mxu1 }
 0x2d3   :  { %v920_v2 = vpop.f32.mrb[9].mxu1  ;;  %v919_v8 = vadd.f32 %v918_v1, %v557_v6 }
 0x2d4   :  { %v922_v3 = vpop.f32.mrb[10].mxu1  ;;  %v921_v9 = vadd.f32 %v920_v2, %v561_v7 }
 0x2d5   :  { %v924_v4 = vpop.f32.mrb[11].mxu1  ;;  %v923_v11 = vadd.f32 %v922_v3, %v557_v6 }
 0x2d6   :  { %v925_v14 = vadd.f32 %v924_v4, %v561_v7 }
 0x2e2   :  { %v961_v10 = vpop.f32.mrb[4].mxu0 }
 0x2e3   :  { %v962_v12 = vadd.f32 %v961_v10, %v919_v8  ;;  %v963_v13 = vpop.f32.mrb[5].mxu0 }
 0x2e4   :  { %v964_v15 = vadd.f32 %v963_v13, %v921_v9  ;;  %v965_v16 = vpop.f32.mrb[6].mxu0 }
 0x2e5   :  { %v966_v17 = vadd.f32 %v965_v16, %v923_v11  ;;  %v967_v18 = vpop.f32.mrb[7].mxu0 }
 0x2e6   :  { %v976_v19 = vadd.f32 %v964_v15, %v962_v12  ;;  %v968_v20 = vadd.f32 %v967_v18, %v925_v14  ;;  %970 = vadd.xlane.f32.xlu0 %v964_v15 }
 0x2e8   :  { %v977_v21 = vadd.f32 %v968_v20, %v966_v17 }
 0x2ea   :  { %972 = vadd.xlane.f32.xlu0 %v968_v20 }
 0x373   :  { %v971_v57 = vpop.xlane.xlu0 %970 }
 0x374   :  { %v974_v22 = vmul.f32 0.16666667, %v971_v57 }
 0x376   :  { %v978_v56 = vsub.f32 %v976_v19, %v974_v22 }
 0x377   :  { %v973_v59 = vpop.xlane.xlu0 %972 }
 0x378   :  { %980 = vst [vmem:[%s1661_s7] sm:$0xff] %v978_v56  ;;  %v975_v23 = vmul.f32 0.16666667, %v973_v59 }
 0x37a   :  { %v979_v24 = vsub.f32 %v977_v21, %v975_v23 }
 0x37c   :  { %981 = vst [vmem:[%s1661_s7 + $0x8] sm:$0xff] %v979_v24 }

</bundles_post_ra>
